<compile_context>
chip_gen: v7x
topology: tpu7x:2x2x1
jax: 0.10.0
libtpu: 0.0.40
codegen_flags: <defaults>
</compile_context>

<pallas_src>
import jax
import jax.numpy as jnp
from jax.experimental import pallas as pl
from jax.experimental.pallas import tpu as pltpu

INPUT_DIM = 784
H_DIM = 400
Z_DIM = 20
ZP = 128            # lane-padded latent width
BIAS_W = 896        # 7 * 128 >= INPUT_DIM, holds the widest bias row


def _round_up(n, m):
    return (n + m - 1) // m * m


def _vae_kernel(x_ref, eps_ref, w1_ref, w23_ref, w4_ref, w5_ref, b_ref,
                res_ref, ml_ref):
    x = x_ref[...]                                   # (TB, 784) f32
    b = b_ref[...]                                   # (8, 896) f32 packed biases
    b1 = b[0:1, 0:H_DIM]
    b23 = b[1:2, 0:2 * ZP]
    b4 = b[2:3, 0:H_DIM]
    b5 = b[3:4, 0:INPUT_DIM]

    # ---- encode: h = relu(x @ W1 + b1) ----
    h = jnp.dot(x.astype(jnp.bfloat16), w1_ref[...],
                preferred_element_type=jnp.float32) + b1
    h = jnp.maximum(h, 0.0)

    # Fused mu || log_sigma head: lanes [0:128) = mu, [128:256) = log_sigma.
    ml = jnp.dot(h.astype(jnp.bfloat16), w23_ref[...],
                 preferred_element_type=jnp.float32) + b23
    mu_p = ml[:, 0:ZP]
    log_sigma_p = ml[:, ZP:2 * ZP]

    # ---- reparameterize: z = mu + exp(0.5 * log_sigma) * eps (all f32) ----
    z = mu_p + jnp.exp(log_sigma_p * 0.5) * eps_ref[...]

    # ---- decode ---- (w4 rows beyond Z_DIM are zero, so padded z lanes are inert)
    h2 = jnp.dot(z.astype(jnp.bfloat16), w4_ref[...],
                 preferred_element_type=jnp.float32) + b4
    h2 = jnp.maximum(h2, 0.0)
    logits = jnp.dot(h2.astype(jnp.bfloat16), w5_ref[...],
                     preferred_element_type=jnp.float32) + b5

    res_ref[...] = jax.nn.sigmoid(logits).astype(res_ref.dtype)
    ml_ref[...] = ml.astype(ml_ref.dtype)


def pack_params(params):
    """Pack f32 (in, out) weights / (1, out) biases into the kernel layout:
    bf16 weights, fused + lane-padded mu/log_sigma head, zero-padded decoder
    input rows, and all biases in one (8, BIAS_W) f32 buffer."""
    w23 = jnp.zeros((H_DIM, 2 * ZP), jnp.float32)
    w23 = w23.at[:, 0:Z_DIM].set(params["w2"])
    w23 = w23.at[:, ZP:ZP + Z_DIM].set(params["w3"])
    w4p = jnp.zeros((ZP, H_DIM), jnp.float32).at[0:Z_DIM, :].set(params["w4"])

    biases = jnp.zeros((8, BIAS_W), jnp.float32)
    biases = biases.at[0, 0:H_DIM].set(params["b1"].reshape(-1))
    biases = biases.at[1, 0:Z_DIM].set(params["b2"].reshape(-1))
    biases = biases.at[1, ZP:ZP + Z_DIM].set(params["b3"].reshape(-1))
    biases = biases.at[2, 0:H_DIM].set(params["b4"].reshape(-1))
    biases = biases.at[3, 0:INPUT_DIM].set(params["b5"].reshape(-1))

    return {
        "w1": params["w1"].astype(jnp.bfloat16),
        "w23": w23.astype(jnp.bfloat16),
        "w4": w4p.astype(jnp.bfloat16),
        "w5": params["w5"].astype(jnp.bfloat16),
        "biases": biases,
    }


def vae_forward(x, packed, eps, *, tb=None):
    """VAE forward pass in one Pallas kernel.

    x:      (B, INPUT_DIM) float32
    packed: output of pack_params()
    eps:    (B, Z_DIM) float32 standard-normal noise (randn_like in PyTorch)
    tb:     batch tile; default 256 (use 128 on v5e) / 128 / round_up(B, 8)
    Returns (res, mu, log_sigma) just like the PyTorch module.
    """
    B = x.shape[0]
    if tb is None:
        if B >= 256:
            tb = 256          # fills a 256-wide MXU M-pass on v6e/v7x
        elif B >= 128:
            tb = 128
        else:
            tb = _round_up(B, 8)
    Bp = _round_up(B, tb)

    xp = x if Bp == B else jnp.pad(x, ((0, Bp - B), (0, 0)))
    eps_p = jnp.zeros((Bp, ZP), jnp.float32).at[:B, :Z_DIM].set(eps)

    grid = (Bp // tb,)

    def batch_tile(width):
        return pl.BlockSpec((tb, width), lambda i: (i, 0))

    def resident(shape):
        return pl.BlockSpec(shape, lambda i: (0, 0))

    matmul_elems = (INPUT_DIM * H_DIM + H_DIM * 2 * ZP + ZP * H_DIM
                    + H_DIM * INPUT_DIM)
    cost = pl.CostEstimate(
        flops=2 * Bp * matmul_elems,
        transcendentals=Bp * (ZP + INPUT_DIM),
        bytes_accessed=(Bp * INPUT_DIM * 4 + Bp * ZP * 4        # x, eps
                        + 2 * matmul_elems                      # bf16 weights
                        + 8 * BIAS_W * 4                        # packed biases
                        + Bp * INPUT_DIM * 4 + Bp * 2 * ZP * 4  # res, mu||logsig
                        ),
    )

    res_p, ml_p = pl.pallas_call(
        _vae_kernel,
        grid=grid,
        in_specs=[
            batch_tile(INPUT_DIM),            # x
            batch_tile(ZP),                   # eps (lane-padded)
            resident((INPUT_DIM, H_DIM)),     # w1
            resident((H_DIM, 2 * ZP)),        # w2 || w3 (fused, lane-padded)
            resident((ZP, H_DIM)),            # w4 (input rows zero-padded)
            resident((H_DIM, INPUT_DIM)),     # w5
            resident((8, BIAS_W)),            # packed biases
        ],
        out_specs=(
            batch_tile(INPUT_DIM),            # res
            batch_tile(2 * ZP),               # mu || log_sigma (lane-dense)
        ),
        out_shape=(
            jax.ShapeDtypeStruct((Bp, INPUT_DIM), jnp.float32),
            jax.ShapeDtypeStruct((Bp, 2 * ZP), jnp.float32),
        ),
        compiler_params=pltpu.CompilerParams(
            dimension_semantics=("parallel",),   # v7x: shard batch over both TCs
        ),
        cost_estimate=cost,
    )(xp, eps_p, packed["w1"], packed["w23"], packed["w4"], packed["w5"],
      packed["biases"])

    res = res_p[:B]
    mu = ml_p[:B, 0:Z_DIM]
    log_sigma = ml_p[:B, ZP:ZP + Z_DIM]
    return res, mu, log_sigma


def init_params(key):
    """Deterministic init matching PyTorch nn.Linear's U(-1/sqrt(fan_in), +1/sqrt(fan_in)).

    Weights are stored transposed vs. PyTorch, i.e. (in_features, out_features)."""
    dims = [
        ("1", INPUT_DIM, H_DIM),
        ("2", H_DIM, Z_DIM),
        ("3", H_DIM, Z_DIM),
        ("4", Z_DIM, H_DIM),
        ("5", H_DIM, INPUT_DIM),
    ]
    params = {}
    keys = jax.random.split(key, 2 * len(dims))
    for i, (name, fan_in, fan_out) in enumerate(dims):
        bound = 1.0 / jnp.sqrt(jnp.float32(fan_in))
        params[f"w{name}"] = jax.random.uniform(
            keys[2 * i], (fan_in, fan_out), minval=-bound, maxval=bound,
            dtype=jnp.float32)
        params[f"b{name}"] = jax.random.uniform(
            keys[2 * i + 1], (1, fan_out), minval=-bound, maxval=bound,
            dtype=jnp.float32)
    return params


def vae_reference(x, params, eps):
    """Pure-JAX f32 reference matching the PyTorch module."""
    h = jax.nn.relu(x @ params["w1"] + params["b1"])
    mu = h @ params["w2"] + params["b2"]
    log_sigma = h @ params["w3"] + params["b3"]
    z = mu + jnp.exp(0.5 * log_sigma) * eps
    h2 = jax.nn.relu(z @ params["w4"] + params["b4"])
    res = jax.nn.sigmoid(h2 @ params["w5"] + params["b5"])
    return res, mu, log_sigma


if __name__ == "__main__":
    key = jax.random.PRNGKey(0)
    k_params, k_x, k_eps = jax.random.split(key, 3)

    B = 8
    params = init_params(k_params)
    packed = pack_params(params)
    x = jax.random.uniform(k_x, (B, INPUT_DIM), dtype=jnp.float32)   # flattened "image"
    # eps ~ N(0,1), matches torch.randn_like(std) (supplied explicitly for determinism)
    eps = jax.random.normal(k_eps, (B, Z_DIM), dtype=jnp.float32)

    res, mu, log_sigma = vae_forward(x, packed, eps)
    jax.block_until_ready((res, mu, log_sigma))

    assert res.shape == (B, INPUT_DIM)
    assert mu.shape == (B, Z_DIM)
    assert log_sigma.shape == (B, Z_DIM)
    assert bool(jnp.all(jnp.isfinite(res)))
    assert bool(jnp.all(jnp.isfinite(mu)))
    assert bool(jnp.all(jnp.isfinite(log_sigma)))

    # Loose tolerance: matmul operands are bf16 (f32 accumulation) vs. f32 reference.
    res_ref, mu_ref, ls_ref = vae_reference(x, params, eps)
    assert float(jnp.max(jnp.abs(res - res_ref))) < 5e-2
    assert float(jnp.max(jnp.abs(mu - mu_ref))) < 5e-2
    assert float(jnp.max(jnp.abs(log_sigma - ls_ref))) < 5e-2

    print("KERNEL_OK")
</pallas_src>

<mosaic_0001>
module attributes {stable_mosaic.version = 11 : i64} {
  func.func @_vae_kernel(%arg0: i32, %arg1: memref<8x784xf32, #tpu.memory_space<vmem>>, %arg2: memref<8x128xf32, #tpu.memory_space<vmem>>, %arg3: memref<784x400xbf16, #tpu.memory_space<vmem>>, %arg4: memref<400x256xbf16, #tpu.memory_space<vmem>>, %arg5: memref<128x400xbf16, #tpu.memory_space<vmem>>, %arg6: memref<400x784xbf16, #tpu.memory_space<vmem>>, %arg7: memref<8x896xf32, #tpu.memory_space<vmem>>, %arg8: memref<8x784xf32, #tpu.memory_space<vmem>>, %arg9: memref<8x256xf32, #tpu.memory_space<vmem>>) attributes {dimension_semantics = [#tpu.dimension_semantics<parallel>], iteration_bounds = array<i64: 1>, scalar_prefetch = 0 : i64, scratch_operands = 0 : i64, tpu.core_type = #tpu.core_type<tc>, window_params = [{transform_indices = @transform_0, window_bounds = array<i64: 8, 784>}, {transform_indices = @transform_1, window_bounds = array<i64: 8, 128>}, {pipeline_mode = #tpu.pipeline_mode<synchronous>, transform_indices = @transform_2, window_bounds = array<i64: 784, 400>}, {pipeline_mode = #tpu.pipeline_mode<synchronous>, transform_indices = @transform_3, window_bounds = array<i64: 400, 256>}, {pipeline_mode = #tpu.pipeline_mode<synchronous>, transform_indices = @transform_4, window_bounds = array<i64: 128, 400>}, {pipeline_mode = #tpu.pipeline_mode<synchronous>, transform_indices = @transform_5, window_bounds = array<i64: 400, 784>}, {pipeline_mode = #tpu.pipeline_mode<synchronous>, transform_indices = @transform_6, window_bounds = array<i64: 8, 896>}, {transform_indices = @transform_7, window_bounds = array<i64: 8, 784>}, {transform_indices = @transform_8, window_bounds = array<i64: 8, 256>}]} {
    %c0 = arith.constant 0 : index
    %c0_0 = arith.constant 0 : index
    %0 = vector.load %arg1[%c0, %c0_0] : memref<8x784xf32, #tpu.memory_space<vmem>>, vector<8x784xf32>
    %c0_1 = arith.constant 0 : index
    %c0_2 = arith.constant 0 : index
    %1 = vector.load %arg7[%c0_1, %c0_2] : memref<8x896xf32, #tpu.memory_space<vmem>>, vector<8x896xf32>
    %2 = vector.extract_strided_slice %1 {offsets = [0, 0], sizes = [1, 400], strides = [1, 1]} : vector<8x896xf32> to vector<1x400xf32>
    %3 = vector.extract_strided_slice %1 {offsets = [1, 0], sizes = [1, 256], strides = [1, 1]} : vector<8x896xf32> to vector<1x256xf32>
    %4 = vector.extract_strided_slice %1 {offsets = [2, 0], sizes = [1, 400], strides = [1, 1]} : vector<8x896xf32> to vector<1x400xf32>
    %5 = vector.extract_strided_slice %1 {offsets = [3, 0], sizes = [1, 784], strides = [1, 1]} : vector<8x896xf32> to vector<1x784xf32>
    %6 = arith.truncf %0 : vector<8x784xf32> to vector<8x784xbf16>
    %c0_3 = arith.constant 0 : index
    %c0_4 = arith.constant 0 : index
    %7 = vector.load %arg3[%c0_3, %c0_4] : memref<784x400xbf16, #tpu.memory_space<vmem>>, vector<784x400xbf16>
    %cst = arith.constant dense<0.000000e+00> : vector<8x400xf32>
    %8 = tpu.matmul %6, %7, %cst {dimension_numbers = #tpu.dot_dimension_numbers<[1], [0], [0], [1], [0, 0, 1, 1], [], []>} : vector<8x784xbf16>, vector<784x400xbf16>, vector<8x400xf32> -> vector<8x400xf32>
    %9 = vector.broadcast %2 : vector<1x400xf32> to vector<8x400xf32>
    %10 = arith.addf %8, %9 : vector<8x400xf32>
    %cst_5 = arith.constant 0.000000e+00 : f32
    %11 = vector.broadcast %cst_5 : f32 to vector<8x400xf32>
    %12 = arith.maximumf %10, %11 : vector<8x400xf32>
    %13 = arith.truncf %12 : vector<8x400xf32> to vector<8x400xbf16>
    %c0_6 = arith.constant 0 : index
    %c0_7 = arith.constant 0 : index
    %14 = vector.load %arg4[%c0_6, %c0_7] : memref<400x256xbf16, #tpu.memory_space<vmem>>, vector<400x256xbf16>
    %cst_8 = arith.constant dense<0.000000e+00> : vector<8x256xf32>
    %15 = tpu.matmul %13, %14, %cst_8 {dimension_numbers = #tpu.dot_dimension_numbers<[1], [0], [0], [1], [0, 0, 1, 1], [], []>} : vector<8x400xbf16>, vector<400x256xbf16>, vector<8x256xf32> -> vector<8x256xf32>
    %16 = vector.broadcast %3 : vector<1x256xf32> to vector<8x256xf32>
    %17 = arith.addf %15, %16 : vector<8x256xf32>
    %18 = vector.extract_strided_slice %17 {offsets = [0, 0], sizes = [8, 128], strides = [1, 1]} : vector<8x256xf32> to vector<8x128xf32>
    %19 = vector.extract_strided_slice %17 {offsets = [0, 128], sizes = [8, 128], strides = [1, 1]} : vector<8x256xf32> to vector<8x128xf32>
    %cst_9 = arith.constant 5.000000e-01 : f32
    %20 = vector.broadcast %cst_9 : f32 to vector<8x128xf32>
    %21 = arith.mulf %19, %20 : vector<8x128xf32>
    %22 = math.exp %21 : vector<8x128xf32>
    %c0_10 = arith.constant 0 : index
    %c0_11 = arith.constant 0 : index
    %23 = vector.load %arg2[%c0_10, %c0_11] : memref<8x128xf32, #tpu.memory_space<vmem>>, vector<8x128xf32>
    %24 = arith.mulf %22, %23 : vector<8x128xf32>
    %25 = arith.addf %18, %24 : vector<8x128xf32>
    %26 = arith.truncf %25 : vector<8x128xf32> to vector<8x128xbf16>
    %c0_12 = arith.constant 0 : index
    %c0_13 = arith.constant 0 : index
    %27 = vector.load %arg5[%c0_12, %c0_13] : memref<128x400xbf16, #tpu.memory_space<vmem>>, vector<128x400xbf16>
    %cst_14 = arith.constant dense<0.000000e+00> : vector<8x400xf32>
    %28 = tpu.matmul %26, %27, %cst_14 {dimension_numbers = #tpu.dot_dimension_numbers<[1], [0], [0], [1], [0, 0, 1, 1], [], []>} : vector<8x128xbf16>, vector<128x400xbf16>, vector<8x400xf32> -> vector<8x400xf32>
    %29 = vector.broadcast %4 : vector<1x400xf32> to vector<8x400xf32>
    %30 = arith.addf %28, %29 : vector<8x400xf32>
    %cst_15 = arith.constant 0.000000e+00 : f32
    %31 = vector.broadcast %cst_15 : f32 to vector<8x400xf32>
    %32 = arith.maximumf %30, %31 : vector<8x400xf32>
    %33 = arith.truncf %32 : vector<8x400xf32> to vector<8x400xbf16>
    %c0_16 = arith.constant 0 : index
    %c0_17 = arith.constant 0 : index
    %34 = vector.load %arg6[%c0_16, %c0_17] : memref<400x784xbf16, #tpu.memory_space<vmem>>, vector<400x784xbf16>
    %cst_18 = arith.constant dense<0.000000e+00> : vector<8x784xf32>
    %35 = tpu.matmul %33, %34, %cst_18 {dimension_numbers = #tpu.dot_dimension_numbers<[1], [0], [0], [1], [0, 0, 1, 1], [], []>} : vector<8x400xbf16>, vector<400x784xbf16>, vector<8x784xf32> -> vector<8x784xf32>
    %36 = vector.broadcast %5 : vector<1x784xf32> to vector<8x784xf32>
    %37 = arith.addf %35, %36 : vector<8x784xf32>
    %38 = arith.negf %37 : vector<8x784xf32>
    %39 = math.exp %38 : vector<8x784xf32>
    %cst_19 = arith.constant 1.000000e+00 : f32
    %40 = vector.broadcast %cst_19 : f32 to vector<8x784xf32>
    %41 = arith.addf %40, %39 : vector<8x784xf32>
    %42 = arith.divf %40, %41 : vector<8x784xf32>
    %c0_20 = arith.constant 0 : index
    %c0_21 = arith.constant 0 : index
    %43 = vector.load %arg8[%c0_20, %c0_21] : memref<8x784xf32, #tpu.memory_space<vmem>>, vector<8x784xf32>
    tpu.vector_store %arg8[%c0_20, %c0_21], %42 {strides = array<i32>} : memref<8x784xf32, #tpu.memory_space<vmem>>, vector<8x784xf32>,
    %c0_22 = arith.constant 0 : index
    %c0_23 = arith.constant 0 : index
    %44 = vector.load %arg9[%c0_22, %c0_23] : memref<8x256xf32, #tpu.memory_space<vmem>>, vector<8x256xf32>
    tpu.vector_store %arg9[%c0_22, %c0_23], %17 {strides = array<i32>} : memref<8x256xf32, #tpu.memory_space<vmem>>, vector<8x256xf32>,
    return
  }
  func.func @transform_0(%arg0: i32) -> (i32, i32) {
    %c0_i32 = arith.constant 0 : i32
    %c0_i32_0 = arith.constant 0 : i32
    return %arg0, %c0_i32 : i32, i32
  }
  func.func @transform_1(%arg0: i32) -> (i32, i32) {
    %c0_i32 = arith.constant 0 : i32
    %c0_i32_0 = arith.constant 0 : i32
    return %arg0, %c0_i32 : i32, i32
  }
  func.func @transform_2(%arg0: i32) -> (i32, i32) {
    %c0_i32 = arith.constant 0 : i32
    %c0_i32_0 = arith.constant 0 : i32
    %c0_i32_1 = arith.constant 0 : i32
    return %c0_i32, %c0_i32_0 : i32, i32
  }
  func.func @transform_3(%arg0: i32) -> (i32, i32) {
    %c0_i32 = arith.constant 0 : i32
    %c0_i32_0 = arith.constant 0 : i32
    %c0_i32_1 = arith.constant 0 : i32
    return %c0_i32, %c0_i32_0 : i32, i32
  }
  func.func @transform_4(%arg0: i32) -> (i32, i32) {
    %c0_i32 = arith.constant 0 : i32
    %c0_i32_0 = arith.constant 0 : i32
    %c0_i32_1 = arith.constant 0 : i32
    return %c0_i32, %c0_i32_0 : i32, i32
  }
  func.func @transform_5(%arg0: i32) -> (i32, i32) {
    %c0_i32 = arith.constant 0 : i32
    %c0_i32_0 = arith.constant 0 : i32
    %c0_i32_1 = arith.constant 0 : i32
    return %c0_i32, %c0_i32_0 : i32, i32
  }
  func.func @transform_6(%arg0: i32) -> (i32, i32) {
    %c0_i32 = arith.constant 0 : i32
    %c0_i32_0 = arith.constant 0 : i32
    %c0_i32_1 = arith.constant 0 : i32
    return %c0_i32, %c0_i32_0 : i32, i32
  }
  func.func @transform_7(%arg0: i32) -> (i32, i32) {
    %c0_i32 = arith.constant 0 : i32
    %c0_i32_0 = arith.constant 0 : i32
    return %arg0, %c0_i32 : i32, i32
  }
  func.func @transform_8(%arg0: i32) -> (i32, i32) {
    %c0_i32 = arith.constant 0 : i32
    %c0_i32_0 = arith.constant 0 : i32
    return %arg0, %c0_i32 : i32, i32
  }
}

</mosaic_0001>

<bundles_post_ra>
// kernel: tpu_custom_call.1
= control target key start
LH: loop header
LB: loop body
LE: loop exit
PB: predicated region body
PF: predicated region fallthrough
CT: control target
= control target key end

     0   :  { %14 = vsyncpa [#allocation3], 0  ;;  %vm1244_vm0 = vcmask 130048   ;;  %s6680_s0 = inlined_call_operand.vmem [shape: f32[8,784], index: 0, kind: input, shape index: {}]   ;;  %s6681_s1 = inlined_call_operand.vmem [shape: f32[8,128], index: 1, kind: input, shape index: {}]   ;;  %s6682_s2 = inlined_call_operand.vmem [shape: bf16[784,400], index: 2, kind: input, shape index: {}]   ;;  %s6683_s3 = inlined_call_operand.vmem [shape: bf16[400,256], index: 3, kind: input, shape index: {}]   ;;  %s6684_s4 = inlined_call_operand.vmem [shape: bf16[128,400], index: 4, kind: input, shape index: {}]   ;;  %s6685_s5 = inlined_call_operand.vmem [shape: bf16[400,784], index: 5, kind: input, shape index: {}]   ;;  %s6686_s6 = inlined_call_operand.vmem [shape: f32[8,896], index: 6, kind: input, shape index: {}]   ;;  %s6687_s7 = inlined_call_operand.hbm [shape: f32[8,784], index: 7, kind: output, shape index: {0}]   ;;  %s6688_s8 = inlined_call_operand.hbm [shape: f32[8,256], index: 8, kind: output, shape index: {1}]  }
   0x1   :  { %v4362_v0 = vld [vmem:[%s6682_s2 + $0x4] ss:$16 sps:$4 sm:$0xff]   ;;  %v4364_v1 = vld [vmem:[%s6682_s2 + $0xc] ss:$16 sps:$4 sm:$0xff]   ;;  %v4366_v2 = vld [vmem:[%s6682_s2] ss:$16 sps:$4 sm:$0xff]  }
   0x2   :  { %1248 = vmatprep.subr.bf16.mxu0 %v4362_v0  ;;  %v4367_v3 = vld [vmem:[%s6682_s2 + $0x8] ss:$16 sps:$4 sm:$0xff]   ;;  %1412 = vmatprep.subr.bf16.mxu1 %v4364_v1  ;;  %v4368_v4 = vld [vmem:[%s6682_s2 + $0x24] ss:$16 sps:$4 sm:$0xff]   ;;  %v4370_v5 = vld [vmem:[%s6682_s2 + $0x2c] ss:$16 sps:$4 sm:$0xff]  }
   0x3   :  { %1249 = vmatpush1.bf16.msra.mxu0 %v4366_v2  ;;  %1413 = vmatpush1.bf16.msra.mxu1 %v4367_v3  ;;  %v4372_v6 = vld [vmem:[%s6682_s2 + $0x20] ss:$16 sps:$4 sm:$0xff]   ;;  %v4373_v7 = vld [vmem:[%s6682_s2 + $0x28] ss:$16 sps:$4 sm:$0xff]   ;;  %v4374_v8 = vld [vmem:[%s6682_s2 + $0x44] ss:$16 sps:$4 sm:$0xff]  }
   0x4   :  { %1250 = vmatprep.subr.bf16.mxu0 %v4368_v4  ;;  %1414 = vmatprep.subr.bf16.mxu1 %v4370_v5  ;;  %v4376_v9 = vld [vmem:[%s6682_s2 + $0x4c] ss:$16 sps:$4 sm:$0xff]   ;;  %v4378_v10 = vld [vmem:[%s6682_s2 + $0x40] ss:$16 sps:$4 sm:$0xff]   ;;  %v4379_v11 = vld [vmem:[%s6682_s2 + $0x48] ss:$16 sps:$4 sm:$0xff]  }
   0x5   :  { %v4380_v12 = vld [vmem:[%s6682_s2 + $0x64] ss:$16 sps:$4 sm:$0xff]   ;;  %v4382_v13 = vld [vmem:[%s6682_s2 + $0x6c] ss:$16 sps:$4 sm:$0xff]   ;;  %v4384_v14 = vld [vmem:[%s6682_s2 + $0x60] ss:$16 sps:$4 sm:$0xff]  }
   0x6   :  { %v4385_v15 = vld [vmem:[%s6682_s2 + $0x68] ss:$16 sps:$4 sm:$0xff]   ;;  %v4386_v16 = vld [vmem:[%s6682_s2 + $0x84] ss:$16 sps:$4 sm:$0xff]   ;;  %v4388_v17 = vld [vmem:[%s6682_s2 + $0x8c] ss:$16 sps:$4 sm:$0xff]  }
   0x7   :  { %1251 = vmatpush1.bf16.msra.mxu0 %v4372_v6  ;;  %1415 = vmatpush1.bf16.msra.mxu1 %v4373_v7  ;;  %v4390_v18 = vld [vmem:[%s6682_s2 + $0x80] ss:$16 sps:$4 sm:$0xff]   ;;  %v4391_v19 = vld [vmem:[%s6682_s2 + $0x88] ss:$16 sps:$4 sm:$0xff]   ;;  %v4392_v20 = vld [vmem:[%s6682_s2 + $0xa4] ss:$16 sps:$4 sm:$0xff]  }
   0x8   :  { %1252 = vmatprep.subr.bf16.mxu0 %v4374_v8  ;;  %1416 = vmatprep.subr.bf16.mxu1 %v4376_v9  ;;  %v4394_v21 = vld [vmem:[%s6682_s2 + $0xac] ss:$16 sps:$4 sm:$0xff]   ;;  %v4396_v22 = vld [vmem:[%s6682_s2 + $0xa0] ss:$16 sps:$4 sm:$0xff]   ;;  %v4397_v23 = vld [vmem:[%s6682_s2 + $0xa8] ss:$16 sps:$4 sm:$0xff]  }
   0x9   :  { %v4398_v24 = vld [vmem:[%s6682_s2 + $0xc4] ss:$16 sps:$4 sm:$0xff]   ;;  %v4400_v25 = vld [vmem:[%s6682_s2 + $0xcc] ss:$16 sps:$4 sm:$0xff]   ;;  %v4402_v26 = vld [vmem:[%s6682_s2 + $0xc0] ss:$16 sps:$4 sm:$0xff]  }
   0xa   :  { %v4403_v27 = vld [vmem:[%s6682_s2 + $0xc8] ss:$16 sps:$4 sm:$0xff]   ;;  %v4404_v28 = vld [vmem:[%s6682_s2 + $0xe4] ss:$16 sps:$4 sm:$0xff]   ;;  %v4406_v29 = vld [vmem:[%s6682_s2 + $0xec] ss:$16 sps:$4 sm:$0xff]  }
   0xb   :  { %1253 = vmatpush1.bf16.msra.mxu0 %v4378_v10  ;;  %1417 = vmatpush1.bf16.msra.mxu1 %v4379_v11  ;;  %v4408_v30 = vld [vmem:[%s6682_s2 + $0xe0] ss:$16 sps:$4 sm:$0xff]   ;;  %v4409_v31 = vld [vmem:[%s6682_s2 + $0xe8] ss:$16 sps:$4 sm:$0xff]   ;;  %v4410_v32 = vld [vmem:[%s6682_s2 + $0x104] ss:$16 sps:$4 sm:$0xff]  }
   0xc   :  { %1254 = vmatprep.subr.bf16.mxu0 %v4380_v12  ;;  %1418 = vmatprep.subr.bf16.mxu1 %v4382_v13  ;;  %v4412_v33 = vld [vmem:[%s6682_s2 + $0x10c] ss:$16 sps:$4 sm:$0xff]   ;;  %v4414_v34 = vld [vmem:[%s6682_s2 + $0x100] ss:$16 sps:$4 sm:$0xff]   ;;  %v4415_v35 = vld [vmem:[%s6682_s2 + $0x108] ss:$16 sps:$4 sm:$0xff]  }
   0xd   :  { %v4416_v36 = vld [vmem:[%s6682_s2 + $0x124] ss:$16 sps:$4 sm:$0xff]   ;;  %v4418_v37 = vld [vmem:[%s6682_s2 + $0x12c] ss:$16 sps:$4 sm:$0xff]   ;;  %v4420_v38 = vld [vmem:[%s6682_s2 + $0x120] ss:$16 sps:$4 sm:$0xff]  }
   0xe   :  { %v4421_v39 = vld [vmem:[%s6682_s2 + $0x128] ss:$16 sps:$4 sm:$0xff]   ;;  %v4422_v40 = vld [vmem:[%s6682_s2 + $0x144] ss:$16 sps:$4 sm:$0xff]   ;;  %v4424_v41 = vld [vmem:[%s6682_s2 + $0x14c] ss:$16 sps:$4 sm:$0xff]  }
   0xf   :  { %1255 = vmatpush1.bf16.msra.mxu0 %v4384_v14  ;;  %1419 = vmatpush1.bf16.msra.mxu1 %v4385_v15  ;;  %v4426_v42 = vld [vmem:[%s6682_s2 + $0x140] ss:$16 sps:$4 sm:$0xff]   ;;  %v4427_v43 = vld [vmem:[%s6682_s2 + $0x148] ss:$16 sps:$4 sm:$0xff]   ;;  %v4428_v44 = vld [vmem:[%s6682_s2 + $0x164] ss:$16 sps:$4 sm:$0xff]  }
  0x10   :  { %1256 = vmatprep.subr.bf16.mxu0 %v4386_v16  ;;  %1420 = vmatprep.subr.bf16.mxu1 %v4388_v17  ;;  %v4430_v45 = vld [vmem:[%s6682_s2 + $0x16c] ss:$16 sps:$4 sm:$0xff]   ;;  %v4432_v47 = vld [vmem:[%s6682_s2 + $0x160] ss:$16 sps:$4 sm:$0xff]   ;;  %v4433_v49 = vld [vmem:[%s6682_s2 + $0x168] ss:$16 sps:$4 sm:$0xff]  }
  0x11   :  { %v32_v46 = vld [vmem:[%s6680_s0 + $0x8] sm:$0xff]  ;;  %v4434_v50 = vld [vmem:[%s6682_s2 + $0x184] ss:$16 sps:$4 sm:$0xff]   ;;  %v4438_v52 = vld [vmem:[%s6682_s2 + $0x180] ss:$16 sps:$4 sm:$0xff]  }
  0x12   :  { %v46_v48 = vpack.c.bf16 %v32_v46, %v32_v46  ;;  %v4436_v51 = vld [vmem:[%s6682_s2 + $0x18c] ss:$16 sps:$4 sm:$0xff]   ;;  %v4439_v53 = vld [vmem:[%s6682_s2 + $0x188] ss:$16 sps:$4 sm:$0xff]   ;;  %v4440_v54 = vld [vmem:[%s6682_s2 + $0x1a4] ss:$16 sps:$4 sm:$0xff]  }
  0x13   :  { %1257 = vmatpush1.bf16.msra.mxu0 %v4390_v18  ;;  %1421 = vmatpush1.bf16.msra.mxu1 %v4391_v19  ;;  %v4442_v55 = vld [vmem:[%s6682_s2 + $0x1ac] ss:$16 sps:$4 sm:$0xff]   ;;  %v4444_v56 = vld [vmem:[%s6682_s2 + $0x1a0] ss:$16 sps:$4 sm:$0xff]   ;;  %v4445_v57 = vld [vmem:[%s6682_s2 + $0x1a8] ss:$16 sps:$4 sm:$0xff]  }
  0x14   :  { %1258 = vmatprep.subr.bf16.mxu0 %v4392_v20  ;;  %1422 = vmatprep.subr.bf16.mxu1 %v4394_v21  ;;  %v4446_v58 = vld [vmem:[%s6682_s2 + $0x1c4] ss:$16 sps:$4 sm:$0xff]   ;;  %v4448_v59 = vld [vmem:[%s6682_s2 + $0x1cc] ss:$16 sps:$4 sm:$0xff]   ;;  %v4450_v60 = vld [vmem:[%s6682_s2 + $0x1c0] ss:$16 sps:$4 sm:$0xff]  }
  0x15   :  { %1280 = vmatprep.mubr.bf16.mxu0 %v46_v48  ;;  %1444 = vmatprep.mubr.bf16.mxu1 %v46_v48  ;;  %v4451_v61 = vld [vmem:[%s6682_s2 + $0x1c8] ss:$16 sps:$4 sm:$0xff]   ;;  %v4452_v62 = vld [vmem:[%s6682_s2 + $0x1e4] ss:$16 sps:$4 sm:$0xff]   ;;  %v4454_v63 = vld [vmem:[%s6682_s2 + $0x1ec] ss:$16 sps:$4 sm:$0xff]  }
  0x16   :  { %v4456_v0 = vld [vmem:[%s6682_s2 + $0x1e0] ss:$16 sps:$4 sm:$0xff]   ;;  %v4457_v1 = vld [vmem:[%s6682_s2 + $0x1e8] ss:$16 sps:$4 sm:$0xff]   ;;  %v4460_v3 = vld [vmem:[%s6682_s2 + $0x204] ss:$16 sps:$4 sm:$0xff]  }
  0x17   :  { %1259 = vmatpush1.bf16.msra.mxu0 %v4396_v22  ;;  %1423 = vmatpush1.bf16.msra.mxu1 %v4397_v23  ;;  %v31_v2 = vld [vmem:[%s6680_s0] sm:$0xff]  ;;  %v4463_v4 = vld [vmem:[%s6682_s2 + $0x20c] ss:$16 sps:$4 sm:$0xff]   ;;  %v4461_v7 = vld [vmem:[%s6682_s2 + $0x208] ss:$16 sps:$4 sm:$0xff]  }
  0x18   :  { %1260 = vmatprep.subr.bf16.mxu0 %v4398_v24  ;;  %1424 = vmatprep.subr.bf16.mxu1 %v4400_v25  ;;  %v45_v5 = vpack.c.bf16 %v31_v2, %v31_v2  ;;  %v4458_v6 = vld [vmem:[%s6682_s2 + $0x200] ss:$16 sps:$4 sm:$0xff]   ;;  %v4466_v8 = vld [vmem:[%s6682_s2 + $0x224] ss:$16 sps:$4 sm:$0xff]   ;;  %v4469_v9 = vld [vmem:[%s6682_s2 + $0x22c] ss:$16 sps:$4 sm:$0xff]  }
  0x19   :  { %v4464_v10 = vld [vmem:[%s6682_s2 + $0x220] ss:$16 sps:$4 sm:$0xff]   ;;  %v4467_v11 = vld [vmem:[%s6682_s2 + $0x228] ss:$16 sps:$4 sm:$0xff]   ;;  %v4472_v12 = vld [vmem:[%s6682_s2 + $0x244] ss:$16 sps:$4 sm:$0xff]  }
  0x1a   :  { %v4475_v13 = vld [vmem:[%s6682_s2 + $0x24c] ss:$16 sps:$4 sm:$0xff]   ;;  %v4470_v14 = vld [vmem:[%s6682_s2 + $0x240] ss:$16 sps:$4 sm:$0xff]   ;;  %v4473_v15 = vld [vmem:[%s6682_s2 + $0x248] ss:$16 sps:$4 sm:$0xff]  }
  0x1b   :  { %1261 = vmatpush1.bf16.msra.mxu0 %v4402_v26  ;;  %1425 = vmatpush1.bf16.msra.mxu1 %v4403_v27  ;;  %v4478_v16 = vld [vmem:[%s6682_s2 + $0x264] ss:$16 sps:$4 sm:$0xff]   ;;  %v4481_v17 = vld [vmem:[%s6682_s2 + $0x26c] ss:$16 sps:$4 sm:$0xff]   ;;  %v4476_v18 = vld [vmem:[%s6682_s2 + $0x260] ss:$16 sps:$4 sm:$0xff]  }
  0x1c   :  { %1262 = vmatprep.subr.bf16.mxu0 %v4404_v28  ;;  %1426 = vmatprep.subr.bf16.mxu1 %v4406_v29  ;;  %v4479_v19 = vld [vmem:[%s6682_s2 + $0x268] ss:$16 sps:$4 sm:$0xff]   ;;  %v4484_v20 = vld [vmem:[%s6682_s2 + $0x284] ss:$16 sps:$4 sm:$0xff]   ;;  %v4487_v21 = vld [vmem:[%s6682_s2 + $0x28c] ss:$16 sps:$4 sm:$0xff]  }
  0x1d   :  { %v4482_v22 = vld [vmem:[%s6682_s2 + $0x280] ss:$16 sps:$4 sm:$0xff]   ;;  %v4485_v23 = vld [vmem:[%s6682_s2 + $0x288] ss:$16 sps:$4 sm:$0xff]   ;;  %v4490_v24 = vld [vmem:[%s6682_s2 + $0x2a4] ss:$16 sps:$4 sm:$0xff]  }
  0x1e   :  { %v4493_v25 = vld [vmem:[%s6682_s2 + $0x2ac] ss:$16 sps:$4 sm:$0xff]   ;;  %v4488_v26 = vld [vmem:[%s6682_s2 + $0x2a0] ss:$16 sps:$4 sm:$0xff]   ;;  %v4491_v27 = vld [vmem:[%s6682_s2 + $0x2a8] ss:$16 sps:$4 sm:$0xff]  }
  0x1f   :  { %1263 = vmatpush1.bf16.msra.mxu0 %v4408_v30  ;;  %1427 = vmatpush1.bf16.msra.mxu1 %v4409_v31  ;;  %v4496_v28 = vld [vmem:[%s6682_s2 + $0x2c4] ss:$16 sps:$4 sm:$0xff]   ;;  %v4499_v29 = vld [vmem:[%s6682_s2 + $0x2cc] ss:$16 sps:$4 sm:$0xff]   ;;  %v4494_v31 = vld [vmem:[%s6682_s2 + $0x2c0] ss:$16 sps:$4 sm:$0xff]  }
  0x20   :  { %1264 = vmatprep.subr.bf16.mxu0 %v4410_v32  ;;  %1428 = vmatprep.subr.bf16.mxu1 %v4412_v33  ;;  %v34_v30 = vld [vmem:[%s6680_s0 + $0x18] sm:$0xff]  ;;  %v4520_v46 = vld [vmem:[%s6682_s2 + $0x344] ss:$16 sps:$4 sm:$0xff]   ;;  %v4518_v48 = vld [vmem:[%s6682_s2 + $0x340] ss:$16 sps:$4 sm:$0xff]  }
  0x21   :  { %v48_v32 = vpack.c.bf16 %v34_v30, %v34_v30  ;;  %v4497_v33 = vld [vmem:[%s6682_s2 + $0x2c8] ss:$16 sps:$4 sm:$0xff]   ;;  %v4550_v2 = vld [vmem:[%s6682_s2 + $0x3e4] ss:$16 sps:$4 sm:$0xff]  }
  0x22   :  { %v4586_v30 = vld [vmem:[%s6682_s2 + $0x4a4] ss:$16 sps:$4 sm:$0xff]  }
  0x23   :  { %1265 = vmatpush1.bf16.msra.mxu0 %v4414_v34  ;;  %1429 = vmatpush1.bf16.msra.mxu1 %v4415_v35  ;;  %v4502_v34 = vld [vmem:[%s6682_s2 + $0x2e4] ss:$16 sps:$4 sm:$0xff]   ;;  %v4505_v35 = vld [vmem:[%s6682_s2 + $0x2ec] ss:$16 sps:$4 sm:$0xff]  }
  0x24   :  { %1266 = vmatprep.subr.bf16.mxu0 %v4416_v36  ;;  %1430 = vmatprep.subr.bf16.mxu1 %v4418_v37  ;;  %v4500_v36 = vld [vmem:[%s6682_s2 + $0x2e0] ss:$16 sps:$4 sm:$0xff]   ;;  %v4503_v37 = vld [vmem:[%s6682_s2 + $0x2e8] ss:$16 sps:$4 sm:$0xff]  }
  0x27   :  { %1267 = vmatpush1.bf16.msra.mxu0 %v4420_v38  ;;  %1431 = vmatpush1.bf16.msra.mxu1 %v4421_v39  ;;  %v4508_v38 = vld [vmem:[%s6682_s2 + $0x304] ss:$16 sps:$4 sm:$0xff]   ;;  %v4511_v39 = vld [vmem:[%s6682_s2 + $0x30c] ss:$16 sps:$4 sm:$0xff]  }
  0x28   :  { %1268 = vmatprep.subr.bf16.mxu0 %v4422_v40  ;;  %1432 = vmatprep.subr.bf16.mxu1 %v4424_v41  ;;  %v4506_v40 = vld [vmem:[%s6682_s2 + $0x300] ss:$16 sps:$4 sm:$0xff]   ;;  %v4509_v41 = vld [vmem:[%s6682_s2 + $0x308] ss:$16 sps:$4 sm:$0xff]  }
  0x2b   :  { %1269 = vmatpush1.bf16.msra.mxu0 %v4426_v42  ;;  %1433 = vmatpush1.bf16.msra.mxu1 %v4427_v43  ;;  %v4514_v42 = vld [vmem:[%s6682_s2 + $0x324] ss:$16 sps:$4 sm:$0xff]   ;;  %v4517_v43 = vld [vmem:[%s6682_s2 + $0x32c] ss:$16 sps:$4 sm:$0xff]  }
  0x2c   :  { %1270 = vmatprep.subr.bf16.mxu0 %v4428_v44  ;;  %1434 = vmatprep.subr.bf16.mxu1 %v4430_v45  ;;  %v4512_v44 = vld [vmem:[%s6682_s2 + $0x320] ss:$16 sps:$4 sm:$0xff]   ;;  %v4515_v45 = vld [vmem:[%s6682_s2 + $0x328] ss:$16 sps:$4 sm:$0xff]  }
  0x2f   :  { %1271 = vmatpush1.bf16.msra.mxu0 %v4432_v47  ;;  %1435 = vmatpush1.bf16.msra.mxu1 %v4433_v49  ;;  %v4523_v47 = vld [vmem:[%s6682_s2 + $0x34c] ss:$16 sps:$4 sm:$0xff]   ;;  %v4521_v49 = vld [vmem:[%s6682_s2 + $0x348] ss:$16 sps:$4 sm:$0xff]  }
  0x30   :  { %1272 = vmatprep.subr.bf16.mxu0 %v4434_v50  ;;  %1436 = vmatprep.subr.bf16.mxu1 %v4436_v51  ;;  %v4526_v50 = vld [vmem:[%s6682_s2 + $0x364] ss:$16 sps:$4 sm:$0xff]   ;;  %v4529_v51 = vld [vmem:[%s6682_s2 + $0x36c] ss:$16 sps:$4 sm:$0xff]  }
  0x33   :  { %1273 = vmatpush1.bf16.msra.mxu0 %v4438_v52  ;;  %1437 = vmatpush1.bf16.msra.mxu1 %v4439_v53  ;;  %v4524_v52 = vld [vmem:[%s6682_s2 + $0x360] ss:$16 sps:$4 sm:$0xff]   ;;  %v4527_v53 = vld [vmem:[%s6682_s2 + $0x368] ss:$16 sps:$4 sm:$0xff]  }
  0x34   :  { %1274 = vmatprep.subr.bf16.mxu0 %v4440_v54  ;;  %1438 = vmatprep.subr.bf16.mxu1 %v4442_v55  ;;  %v4532_v54 = vld [vmem:[%s6682_s2 + $0x384] ss:$16 sps:$4 sm:$0xff]   ;;  %v4535_v55 = vld [vmem:[%s6682_s2 + $0x38c] ss:$16 sps:$4 sm:$0xff]  }
  0x37   :  { %1275 = vmatpush1.bf16.msra.mxu0 %v4444_v56  ;;  %1439 = vmatpush1.bf16.msra.mxu1 %v4445_v57  ;;  %v4530_v56 = vld [vmem:[%s6682_s2 + $0x380] ss:$16 sps:$4 sm:$0xff]   ;;  %v4533_v57 = vld [vmem:[%s6682_s2 + $0x388] ss:$16 sps:$4 sm:$0xff]  }
  0x38   :  { %1276 = vmatprep.subr.bf16.mxu0 %v4446_v58  ;;  %1440 = vmatprep.subr.bf16.mxu1 %v4448_v59  ;;  %v4538_v58 = vld [vmem:[%s6682_s2 + $0x3a4] ss:$16 sps:$4 sm:$0xff]   ;;  %v4541_v59 = vld [vmem:[%s6682_s2 + $0x3ac] ss:$16 sps:$4 sm:$0xff]  }
  0x3b   :  { %1277 = vmatpush1.bf16.msra.mxu0 %v4450_v60  ;;  %1441 = vmatpush1.bf16.msra.mxu1 %v4451_v61  ;;  %v4536_v60 = vld [vmem:[%s6682_s2 + $0x3a0] ss:$16 sps:$4 sm:$0xff]   ;;  %v4539_v61 = vld [vmem:[%s6682_s2 + $0x3a8] ss:$16 sps:$4 sm:$0xff]  }
  0x3c   :  { %1278 = vmatprep.subr.bf16.mxu0 %v4452_v62  ;;  %1442 = vmatprep.subr.bf16.mxu1 %v4454_v63  ;;  %v4544_v62 = vld [vmem:[%s6682_s2 + $0x3c4] ss:$16 sps:$4 sm:$0xff]   ;;  %v4547_v63 = vld [vmem:[%s6682_s2 + $0x3cc] ss:$16 sps:$4 sm:$0xff]  }
  0x3f   :  { %1279 = vmatpush1.bf16.msra.mxu0 %v4456_v0  ;;  %1443 = vmatpush1.bf16.msra.mxu1 %v4457_v1  ;;  %v4542_v0 = vld [vmem:[%s6682_s2 + $0x3c0] ss:$16 sps:$4 sm:$0xff]   ;;  %v4545_v1 = vld [vmem:[%s6682_s2 + $0x3c8] ss:$16 sps:$4 sm:$0xff]  }
  0x40   :  { %1289 = vmatprep.subr.bf16.mxu0 %v4460_v3  ;;  %1453 = vmatprep.subr.bf16.mxu1 %v4463_v4  ;;  %v4553_v3 = vld [vmem:[%s6682_s2 + $0x3ec] ss:$16 sps:$4 sm:$0xff]   ;;  %v4548_v4 = vld [vmem:[%s6682_s2 + $0x3e0] ss:$16 sps:$4 sm:$0xff]  }
  0x42   :  { %1281 = vmatmul.mubr.bf16.vlgmr.msra.gmra.mrb[0].mxu0 %v45_v5  ;;  %1445 = vmatmul.mubr.bf16.vlgmr.msra.gmra.mrb[0].mxu1 %v45_v5  ;;  %v4551_v5 = vld [vmem:[%s6682_s2 + $0x3e8] ss:$16 sps:$4 sm:$0xff]  }
  0x43   :  { %1290 = vmatpush1.bf16.msra.mxu0 %v4458_v6  ;;  %1454 = vmatpush1.bf16.msra.mxu1 %v4461_v7  ;;  %v4556_v6 = vld [vmem:[%s6682_s2 + $0x404] ss:$16 sps:$4 sm:$0xff]  }
  0x44   :  { %1291 = vmatprep.subr.bf16.mxu0 %v4466_v8  ;;  %1455 = vmatprep.subr.bf16.mxu1 %v4469_v9  ;;  %v33_v7 = vld [vmem:[%s6680_s0 + $0x10] sm:$0xff]  ;;  %v4559_v8 = vld [vmem:[%s6682_s2 + $0x40c] ss:$16 sps:$4 sm:$0xff]  }
  0x45   :  { %1321 = vmatprep.mubr.bf16.mxu0 %v48_v32  ;;  %1485 = vmatprep.mubr.bf16.mxu1 %v48_v32  ;;  %v4554_v9 = vld [vmem:[%s6682_s2 + $0x400] ss:$16 sps:$4 sm:$0xff]  }
  0x46   :  { %v4584_v32 = vld [vmem:[%s6682_s2 + $0x4a0] ss:$16 sps:$4 sm:$0xff]  }
  0x47   :  { %1292 = vmatpush1.bf16.msra.mxu0 %v4464_v10  ;;  %1456 = vmatpush1.bf16.msra.mxu1 %v4467_v11  ;;  %v47_v10 = vpack.c.bf16 %v33_v7, %v33_v7  ;;  %v4557_v11 = vld [vmem:[%s6682_s2 + $0x408] ss:$16 sps:$4 sm:$0xff]   ;;  %v4649_v7 = vld [vmem:[%s6682_s2 + $0x5ec] ss:$16 sps:$4 sm:$0xff]  }
  0x48   :  { %1293 = vmatprep.subr.bf16.mxu0 %v4472_v12  ;;  %1457 = vmatprep.subr.bf16.mxu1 %v4475_v13  ;;  %v4562_v12 = vld [vmem:[%s6682_s2 + $0x424] ss:$16 sps:$4 sm:$0xff]   ;;  %v4565_v13 = vld [vmem:[%s6682_s2 + $0x42c] ss:$16 sps:$4 sm:$0xff]  }
  0x4b   :  { %1294 = vmatpush1.bf16.msra.mxu0 %v4470_v14  ;;  %1458 = vmatpush1.bf16.msra.mxu1 %v4473_v15  ;;  %v36_v14 = vld [vmem:[%s6680_s0 + $0x28] sm:$0xff] }
  0x4c   :  { %1295 = vmatprep.subr.bf16.mxu0 %v4478_v16  ;;  %1459 = vmatprep.subr.bf16.mxu1 %v4481_v17  ;;  %v50_v15 = vpack.c.bf16 %v36_v14, %v36_v14  ;;  %v4560_v16 = vld [vmem:[%s6682_s2 + $0x420] ss:$16 sps:$4 sm:$0xff]   ;;  %v4563_v17 = vld [vmem:[%s6682_s2 + $0x428] ss:$16 sps:$4 sm:$0xff]  }
  0x4d   :  { %v4653_v14 = vld [vmem:[%s6682_s2 + $0x608] ss:$16 sps:$4 sm:$0xff]  }
  0x4f   :  { %1296 = vmatpush1.bf16.msra.mxu0 %v4476_v18  ;;  %1460 = vmatpush1.bf16.msra.mxu1 %v4479_v19  ;;  %v4568_v18 = vld [vmem:[%s6682_s2 + $0x444] ss:$16 sps:$4 sm:$0xff]   ;;  %v4571_v19 = vld [vmem:[%s6682_s2 + $0x44c] ss:$16 sps:$4 sm:$0xff]  }
  0x50   :  { %1297 = vmatprep.subr.bf16.mxu0 %v4484_v20  ;;  %1461 = vmatprep.subr.bf16.mxu1 %v4487_v21  ;;  %v4566_v20 = vld [vmem:[%s6682_s2 + $0x440] ss:$16 sps:$4 sm:$0xff]   ;;  %v4569_v21 = vld [vmem:[%s6682_s2 + $0x448] ss:$16 sps:$4 sm:$0xff]  }
  0x53   :  { %1298 = vmatpush1.bf16.msra.mxu0 %v4482_v22  ;;  %1462 = vmatpush1.bf16.msra.mxu1 %v4485_v23  ;;  %v4574_v22 = vld [vmem:[%s6682_s2 + $0x464] ss:$16 sps:$4 sm:$0xff]   ;;  %v4577_v23 = vld [vmem:[%s6682_s2 + $0x46c] ss:$16 sps:$4 sm:$0xff]  }
  0x54   :  { %1299 = vmatprep.subr.bf16.mxu0 %v4490_v24  ;;  %1463 = vmatprep.subr.bf16.mxu1 %v4493_v25  ;;  %v4572_v24 = vld [vmem:[%s6682_s2 + $0x460] ss:$16 sps:$4 sm:$0xff]   ;;  %v4575_v25 = vld [vmem:[%s6682_s2 + $0x468] ss:$16 sps:$4 sm:$0xff]  }
  0x57   :  { %1300 = vmatpush1.bf16.msra.mxu0 %v4488_v26  ;;  %1464 = vmatpush1.bf16.msra.mxu1 %v4491_v27  ;;  %v4580_v26 = vld [vmem:[%s6682_s2 + $0x484] ss:$16 sps:$4 sm:$0xff]   ;;  %v4583_v27 = vld [vmem:[%s6682_s2 + $0x48c] ss:$16 sps:$4 sm:$0xff]  }
  0x58   :  { %1301 = vmatprep.subr.bf16.mxu0 %v4496_v28  ;;  %1465 = vmatprep.subr.bf16.mxu1 %v4499_v29  ;;  %v4578_v28 = vld [vmem:[%s6682_s2 + $0x480] ss:$16 sps:$4 sm:$0xff]   ;;  %v4581_v29 = vld [vmem:[%s6682_s2 + $0x488] ss:$16 sps:$4 sm:$0xff]  }
  0x5b   :  { %1302 = vmatpush1.bf16.msra.mxu0 %v4494_v31  ;;  %1466 = vmatpush1.bf16.msra.mxu1 %v4497_v33  ;;  %v4589_v31 = vld [vmem:[%s6682_s2 + $0x4ac] ss:$16 sps:$4 sm:$0xff]   ;;  %v4587_v33 = vld [vmem:[%s6682_s2 + $0x4a8] ss:$16 sps:$4 sm:$0xff]  }
  0x5c   :  { %1303 = vmatprep.subr.bf16.mxu0 %v4502_v34  ;;  %1467 = vmatprep.subr.bf16.mxu1 %v4505_v35  ;;  %v4592_v34 = vld [vmem:[%s6682_s2 + $0x4c4] ss:$16 sps:$4 sm:$0xff]   ;;  %v4595_v35 = vld [vmem:[%s6682_s2 + $0x4cc] ss:$16 sps:$4 sm:$0xff]  }
  0x5f   :  { %1304 = vmatpush1.bf16.msra.mxu0 %v4500_v36  ;;  %1468 = vmatpush1.bf16.msra.mxu1 %v4503_v37  ;;  %v4590_v36 = vld [vmem:[%s6682_s2 + $0x4c0] ss:$16 sps:$4 sm:$0xff]   ;;  %v4593_v37 = vld [vmem:[%s6682_s2 + $0x4c8] ss:$16 sps:$4 sm:$0xff]  }
  0x60   :  { %1305 = vmatprep.subr.bf16.mxu0 %v4508_v38  ;;  %1469 = vmatprep.subr.bf16.mxu1 %v4511_v39  ;;  %v4598_v38 = vld [vmem:[%s6682_s2 + $0x4e4] ss:$16 sps:$4 sm:$0xff]   ;;  %v4601_v39 = vld [vmem:[%s6682_s2 + $0x4ec] ss:$16 sps:$4 sm:$0xff]  }
  0x63   :  { %1306 = vmatpush1.bf16.msra.mxu0 %v4506_v40  ;;  %1470 = vmatpush1.bf16.msra.mxu1 %v4509_v41  ;;  %v4596_v40 = vld [vmem:[%s6682_s2 + $0x4e0] ss:$16 sps:$4 sm:$0xff]   ;;  %v4599_v41 = vld [vmem:[%s6682_s2 + $0x4e8] ss:$16 sps:$4 sm:$0xff]  }
  0x64   :  { %1307 = vmatprep.subr.bf16.mxu0 %v4514_v42  ;;  %1471 = vmatprep.subr.bf16.mxu1 %v4517_v43  ;;  %v4604_v42 = vld [vmem:[%s6682_s2 + $0x504] ss:$16 sps:$4 sm:$0xff]   ;;  %v4607_v43 = vld [vmem:[%s6682_s2 + $0x50c] ss:$16 sps:$4 sm:$0xff]  }
  0x67   :  { %1308 = vmatpush1.bf16.msra.mxu0 %v4512_v44  ;;  %1472 = vmatpush1.bf16.msra.mxu1 %v4515_v45  ;;  %v4602_v44 = vld [vmem:[%s6682_s2 + $0x500] ss:$16 sps:$4 sm:$0xff]   ;;  %v4605_v45 = vld [vmem:[%s6682_s2 + $0x508] ss:$16 sps:$4 sm:$0xff]  }
  0x68   :  { %1309 = vmatprep.subr.bf16.mxu0 %v4520_v46  ;;  %1473 = vmatprep.subr.bf16.mxu1 %v4523_v47  ;;  %v4610_v46 = vld [vmem:[%s6682_s2 + $0x524] ss:$16 sps:$4 sm:$0xff]   ;;  %v4613_v47 = vld [vmem:[%s6682_s2 + $0x52c] ss:$16 sps:$4 sm:$0xff]  }
  0x6b   :  { %1310 = vmatpush1.bf16.msra.mxu0 %v4518_v48  ;;  %1474 = vmatpush1.bf16.msra.mxu1 %v4521_v49  ;;  %v4608_v48 = vld [vmem:[%s6682_s2 + $0x520] ss:$16 sps:$4 sm:$0xff]   ;;  %v4611_v49 = vld [vmem:[%s6682_s2 + $0x528] ss:$16 sps:$4 sm:$0xff]  }
  0x6c   :  { %1311 = vmatprep.subr.bf16.mxu0 %v4526_v50  ;;  %1475 = vmatprep.subr.bf16.mxu1 %v4529_v51  ;;  %v4616_v50 = vld [vmem:[%s6682_s2 + $0x544] ss:$16 sps:$4 sm:$0xff]   ;;  %v4619_v51 = vld [vmem:[%s6682_s2 + $0x54c] ss:$16 sps:$4 sm:$0xff]  }
  0x6f   :  { %1312 = vmatpush1.bf16.msra.mxu0 %v4524_v52  ;;  %1476 = vmatpush1.bf16.msra.mxu1 %v4527_v53  ;;  %v4614_v52 = vld [vmem:[%s6682_s2 + $0x540] ss:$16 sps:$4 sm:$0xff]   ;;  %v4617_v53 = vld [vmem:[%s6682_s2 + $0x548] ss:$16 sps:$4 sm:$0xff]  }
  0x70   :  { %1313 = vmatprep.subr.bf16.mxu0 %v4532_v54  ;;  %1477 = vmatprep.subr.bf16.mxu1 %v4535_v55  ;;  %v4622_v54 = vld [vmem:[%s6682_s2 + $0x564] ss:$16 sps:$4 sm:$0xff]   ;;  %v4625_v55 = vld [vmem:[%s6682_s2 + $0x56c] ss:$16 sps:$4 sm:$0xff]  }
  0x73   :  { %1314 = vmatpush1.bf16.msra.mxu0 %v4530_v56  ;;  %1478 = vmatpush1.bf16.msra.mxu1 %v4533_v57  ;;  %v4620_v56 = vld [vmem:[%s6682_s2 + $0x560] ss:$16 sps:$4 sm:$0xff]   ;;  %v4623_v57 = vld [vmem:[%s6682_s2 + $0x568] ss:$16 sps:$4 sm:$0xff]  }
  0x74   :  { %1315 = vmatprep.subr.bf16.mxu0 %v4538_v58  ;;  %1479 = vmatprep.subr.bf16.mxu1 %v4541_v59  ;;  %v4628_v58 = vld [vmem:[%s6682_s2 + $0x584] ss:$16 sps:$4 sm:$0xff]   ;;  %v4631_v59 = vld [vmem:[%s6682_s2 + $0x58c] ss:$16 sps:$4 sm:$0xff]  }
  0x77   :  { %1316 = vmatpush1.bf16.msra.mxu0 %v4536_v60  ;;  %1480 = vmatpush1.bf16.msra.mxu1 %v4539_v61  ;;  %v4626_v60 = vld [vmem:[%s6682_s2 + $0x580] ss:$16 sps:$4 sm:$0xff]   ;;  %v4629_v61 = vld [vmem:[%s6682_s2 + $0x588] ss:$16 sps:$4 sm:$0xff]  }
  0x78   :  { %1317 = vmatprep.subr.bf16.mxu0 %v4544_v62  ;;  %1481 = vmatprep.subr.bf16.mxu1 %v4547_v63  ;;  %v4634_v62 = vld [vmem:[%s6682_s2 + $0x5a4] ss:$16 sps:$4 sm:$0xff]   ;;  %v4637_v63 = vld [vmem:[%s6682_s2 + $0x5ac] ss:$16 sps:$4 sm:$0xff]  }
  0x7b   :  { %1318 = vmatpush1.bf16.msra.mxu0 %v4542_v0  ;;  %1482 = vmatpush1.bf16.msra.mxu1 %v4545_v1  ;;  %v4632_v0 = vld [vmem:[%s6682_s2 + $0x5a0] ss:$16 sps:$4 sm:$0xff]   ;;  %v4635_v1 = vld [vmem:[%s6682_s2 + $0x5a8] ss:$16 sps:$4 sm:$0xff]  }
  0x7c   :  { %1319 = vmatprep.subr.bf16.mxu0 %v4550_v2  ;;  %1483 = vmatprep.subr.bf16.mxu1 %v4553_v3  ;;  %v4640_v2 = vld [vmem:[%s6682_s2 + $0x5c4] ss:$16 sps:$4 sm:$0xff]   ;;  %v4643_v3 = vld [vmem:[%s6682_s2 + $0x5cc] ss:$16 sps:$4 sm:$0xff]  }
  0x7f   :  { %1320 = vmatpush1.bf16.msra.mxu0 %v4548_v4  ;;  %1484 = vmatpush1.bf16.msra.mxu1 %v4551_v5  ;;  %v4638_v4 = vld [vmem:[%s6682_s2 + $0x5c0] ss:$16 sps:$4 sm:$0xff]   ;;  %v4641_v5 = vld [vmem:[%s6682_s2 + $0x5c8] ss:$16 sps:$4 sm:$0xff]  }
  0x80   :  { %1330 = vmatprep.subr.bf16.mxu0 %v4556_v6  ;;  %1494 = vmatprep.subr.bf16.mxu1 %v4559_v8  ;;  %v4646_v6 = vld [vmem:[%s6682_s2 + $0x5e4] ss:$16 sps:$4 sm:$0xff]   ;;  %v4644_v8 = vld [vmem:[%s6682_s2 + $0x5e0] ss:$16 sps:$4 sm:$0xff]  }
  0x82   :  { %1322 = vmatmul.mubr.bf16.vlgmr.msra.gmra.mrb[0].mxu0 %v47_v10  ;;  %1486 = vmatmul.mubr.bf16.vlgmr.msra.gmra.mrb[0].mxu1 %v47_v10  ;;  %v35_v10 = vld [vmem:[%s6680_s0 + $0x20] sm:$0xff] }
  0x83   :  { %1331 = vmatpush1.bf16.msra.mxu0 %v4554_v9  ;;  %1495 = vmatpush1.bf16.msra.mxu1 %v4557_v11  ;;  %v4647_v9 = vld [vmem:[%s6682_s2 + $0x5e8] ss:$16 sps:$4 sm:$0xff]   ;;  %v4652_v11 = vld [vmem:[%s6682_s2 + $0x604] ss:$16 sps:$4 sm:$0xff]  }
  0x84   :  { %1332 = vmatprep.subr.bf16.mxu0 %v4562_v12  ;;  %1496 = vmatprep.subr.bf16.mxu1 %v4565_v13  ;;  %v4655_v12 = vld [vmem:[%s6682_s2 + $0x60c] ss:$16 sps:$4 sm:$0xff]   ;;  %v4650_v13 = vld [vmem:[%s6682_s2 + $0x600] ss:$16 sps:$4 sm:$0xff]  }
  0x85   :  { %1362 = vmatprep.mubr.bf16.mxu0 %v50_v15  ;;  %1526 = vmatprep.mubr.bf16.mxu1 %v50_v15  ;;  %v49_v15 = vpack.c.bf16 %v35_v10, %v35_v10 }
  0x87   :  { %1333 = vmatpush1.bf16.msra.mxu0 %v4560_v16  ;;  %1497 = vmatpush1.bf16.msra.mxu1 %v4563_v17  ;;  %v4658_v16 = vld [vmem:[%s6683_s3 + $0x4] ss:$8 sps:$4 sm:$0xff]   ;;  %v5110_v17 = vmov 0  }
  0x88   :  { %1334 = vmatprep.subr.bf16.mxu0 %v4568_v18  ;;  %1498 = vmatprep.subr.bf16.mxu1 %v4571_v19  ;;  %v37_v18 = vld [vmem:[%s6680_s0 + $0x30] sm:$0xff]  ;;  %v4656_v19 = vld [vmem:[%s6683_s3] ss:$8 sps:$4 sm:$0xff]  }
  0x8b   :  { %1335 = vmatpush1.bf16.msra.mxu0 %v4566_v20  ;;  %1499 = vmatpush1.bf16.msra.mxu1 %v4569_v21  ;;  %v51_v20 = vpack.c.bf16 %v37_v18, %v37_v18  ;;  %v4661_v21 = vld [vmem:[%s6683_s3 + $0x14] ss:$8 sps:$4 sm:$0xff]  }
  0x8c   :  { %1336 = vmatprep.subr.bf16.mxu0 %v4574_v22  ;;  %1500 = vmatprep.subr.bf16.mxu1 %v4577_v23  ;;  %v4659_v22 = vld [vmem:[%s6683_s3 + $0x10] ss:$8 sps:$4 sm:$0xff]   ;;  %v4664_v23 = vld [vmem:[%s6683_s3 + $0x24] ss:$8 sps:$4 sm:$0xff]  }
  0x8f   :  { %1337 = vmatpush1.bf16.msra.mxu0 %v4572_v24  ;;  %1501 = vmatpush1.bf16.msra.mxu1 %v4575_v25  ;;  %v4662_v24 = vld [vmem:[%s6683_s3 + $0x20] ss:$8 sps:$4 sm:$0xff]   ;;  %v4667_v25 = vld [vmem:[%s6683_s3 + $0x34] ss:$8 sps:$4 sm:$0xff]  }
  0x90   :  { %1338 = vmatprep.subr.bf16.mxu0 %v4580_v26  ;;  %1502 = vmatprep.subr.bf16.mxu1 %v4583_v27  ;;  %v4665_v26 = vld [vmem:[%s6683_s3 + $0x30] ss:$8 sps:$4 sm:$0xff]   ;;  %v4670_v27 = vld [vmem:[%s6683_s3 + $0x44] ss:$8 sps:$4 sm:$0xff]  }
  0x93   :  { %1339 = vmatpush1.bf16.msra.mxu0 %v4578_v28  ;;  %1503 = vmatpush1.bf16.msra.mxu1 %v4581_v29  ;;  %v4668_v28 = vld [vmem:[%s6683_s3 + $0x40] ss:$8 sps:$4 sm:$0xff]   ;;  %v4673_v29 = vld [vmem:[%s6683_s3 + $0x54] ss:$8 sps:$4 sm:$0xff]  }
  0x94   :  { %1340 = vmatprep.subr.bf16.mxu0 %v4586_v30  ;;  %1504 = vmatprep.subr.bf16.mxu1 %v4589_v31  ;;  %v4671_v30 = vld [vmem:[%s6683_s3 + $0x50] ss:$8 sps:$4 sm:$0xff]   ;;  %v4676_v31 = vld [vmem:[%s6683_s3 + $0x64] ss:$8 sps:$4 sm:$0xff]  }
  0x97   :  { %1341 = vmatpush1.bf16.msra.mxu0 %v4584_v32  ;;  %1505 = vmatpush1.bf16.msra.mxu1 %v4587_v33  ;;  %v4674_v32 = vld [vmem:[%s6683_s3 + $0x60] ss:$8 sps:$4 sm:$0xff]   ;;  %v4679_v33 = vld [vmem:[%s6683_s3 + $0x74] ss:$8 sps:$4 sm:$0xff]  }
  0x98   :  { %1342 = vmatprep.subr.bf16.mxu0 %v4592_v34  ;;  %1506 = vmatprep.subr.bf16.mxu1 %v4595_v35  ;;  %v4677_v34 = vld [vmem:[%s6683_s3 + $0x70] ss:$8 sps:$4 sm:$0xff]   ;;  %v4682_v35 = vld [vmem:[%s6683_s3 + $0x84] ss:$8 sps:$4 sm:$0xff]  }
  0x9b   :  { %1343 = vmatpush1.bf16.msra.mxu0 %v4590_v36  ;;  %1507 = vmatpush1.bf16.msra.mxu1 %v4593_v37  ;;  %v4680_v36 = vld [vmem:[%s6683_s3 + $0x80] ss:$8 sps:$4 sm:$0xff]  }
  0x9c   :  { %1344 = vmatprep.subr.bf16.mxu0 %v4598_v38  ;;  %1508 = vmatprep.subr.bf16.mxu1 %v4601_v39 }
  0x9f   :  { %1345 = vmatpush1.bf16.msra.mxu0 %v4596_v40  ;;  %1509 = vmatpush1.bf16.msra.mxu1 %v4599_v41 }
  0xa0   :  { %1346 = vmatprep.subr.bf16.mxu0 %v4604_v42  ;;  %1510 = vmatprep.subr.bf16.mxu1 %v4607_v43 }
  0xa3   :  { %1347 = vmatpush1.bf16.msra.mxu0 %v4602_v44  ;;  %1511 = vmatpush1.bf16.msra.mxu1 %v4605_v45 }
  0xa4   :  { %1348 = vmatprep.subr.bf16.mxu0 %v4610_v46  ;;  %1512 = vmatprep.subr.bf16.mxu1 %v4613_v47 }
  0xa7   :  { %1349 = vmatpush1.bf16.msra.mxu0 %v4608_v48  ;;  %1513 = vmatpush1.bf16.msra.mxu1 %v4611_v49 }
  0xa8   :  { %1350 = vmatprep.subr.bf16.mxu0 %v4616_v50  ;;  %1514 = vmatprep.subr.bf16.mxu1 %v4619_v51 }
  0xab   :  { %1351 = vmatpush1.bf16.msra.mxu0 %v4614_v52  ;;  %1515 = vmatpush1.bf16.msra.mxu1 %v4617_v53 }
  0xac   :  { %1352 = vmatprep.subr.bf16.mxu0 %v4622_v54  ;;  %1516 = vmatprep.subr.bf16.mxu1 %v4625_v55 }
  0xaf   :  { %1353 = vmatpush1.bf16.msra.mxu0 %v4620_v56  ;;  %1517 = vmatpush1.bf16.msra.mxu1 %v4623_v57 }
  0xb0   :  { %1354 = vmatprep.subr.bf16.mxu0 %v4628_v58  ;;  %1518 = vmatprep.subr.bf16.mxu1 %v4631_v59 }
  0xb3   :  { %1355 = vmatpush1.bf16.msra.mxu0 %v4626_v60  ;;  %1519 = vmatpush1.bf16.msra.mxu1 %v4629_v61 }
  0xb4   :  { %1356 = vmatprep.subr.bf16.mxu0 %v4634_v62  ;;  %1520 = vmatprep.subr.bf16.mxu1 %v4637_v63 }
  0xb7   :  { %1357 = vmatpush1.bf16.msra.mxu0 %v4632_v0  ;;  %1521 = vmatpush1.bf16.msra.mxu1 %v4635_v1 }
  0xb8   :  { %1358 = vmatprep.subr.bf16.mxu0 %v4640_v2  ;;  %1522 = vmatprep.subr.bf16.mxu1 %v4643_v3 }
  0xbb   :  { %1359 = vmatpush1.bf16.msra.mxu0 %v4638_v4  ;;  %1523 = vmatpush1.bf16.msra.mxu1 %v4641_v5 }
  0xbc   :  { %1360 = vmatprep.subr.bf16.mxu0 %v4646_v6  ;;  %1524 = vmatprep.subr.bf16.mxu1 %v4649_v7 }
  0xbf   :  { %1361 = vmatpush1.bf16.msra.mxu0 %v4644_v8  ;;  %1525 = vmatpush1.bf16.msra.mxu1 %v4647_v9 }
  0xc0   :  { %1371 = vmatprep.subr.bf16.mxu0 %v4652_v11  ;;  %1535 = vmatprep.subr.bf16.mxu1 %v4655_v12 }
  0xc2   :  { %1363 = vmatmul.mubr.bf16.vlgmr.msra.gmra.mrb[0].mxu0 %v49_v15  ;;  %1527 = vmatmul.mubr.bf16.vlgmr.msra.gmra.mrb[0].mxu1 %v49_v15 }
  0xc3   :  { %1372 = vmatpush1.bf16.msra.mxu0 %v4650_v13  ;;  %1536 = vmatpush1.bf16.msra.mxu1 %v4653_v14 }
  0xc4   :  { %1403 = vmatprep.mubr.bf16.mxu0 %v5110_v17  ;;  %1567 = vmatprep.mubr.bf16.mxu1 %v5110_v17 }
  0xc5   :  { %1895 = vmatprep.subr.bf16.mxu0 %v4658_v16 }
  0xce   :  { %4014 = vmatmul.mubr.msk.bf16.vlgmr.msra.gmra.mrb[0].mxu0 %vm1244_vm0, %v51_v20  ;;  %4015 = vmatmul.mubr.msk.bf16.vlgmr.msra.gmra.mrb[0].mxu1 %vm1244_vm0, %v51_v20 }
  0xcf   :  { %1896 = vmatpush1.bf16.msra.mxu0 %v4656_v19  ;;  %2224 = vmatprep.mubr.bf16.mxu1 %v5110_v17 }
  0xd0   :  { %1897 = vmatprep.subr.bf16.mxu0 %v4661_v21 }
  0xd3   :  { %1898 = vmatpush1.bf16.msra.mxu0 %v4659_v22 }
  0xd4   :  { %1899 = vmatprep.subr.bf16.mxu0 %v4664_v23 }
  0xd7   :  { %1900 = vmatpush1.bf16.msra.mxu0 %v4662_v24 }
  0xd8   :  { %1901 = vmatprep.subr.bf16.mxu0 %v4667_v25 }
  0xdb   :  { %1902 = vmatpush1.bf16.msra.mxu0 %v4665_v26 }
  0xdc   :  { %1903 = vmatprep.subr.bf16.mxu0 %v4670_v27 }
  0xdf   :  { %1904 = vmatpush1.bf16.msra.mxu0 %v4668_v28 }
  0xe0   :  { %1905 = vmatprep.subr.bf16.mxu0 %v4673_v29 }
  0xe3   :  { %1906 = vmatpush1.bf16.msra.mxu0 %v4671_v30 }
  0xe4   :  { %1907 = vmatprep.subr.bf16.mxu0 %v4676_v31 }
  0xe7   :  { %1908 = vmatpush1.bf16.msra.mxu0 %v4674_v32 }
  0xe8   :  { %1909 = vmatprep.subr.bf16.mxu0 %v4679_v33 }
  0xeb   :  { %1910 = vmatpush1.bf16.msra.mxu0 %v4677_v34 }
  0xec   :  { %15 = vsyncpa [#allocation5], 0  ;;  %1911 = vmatprep.subr.bf16.mxu0 %v4682_v35  ;;  %v4685_v37 = vld [vmem:[%s6683_s3 + $0x94] ss:$8 sps:$4 sm:$0xff]   ;;  %v4683_v38 = vld [vmem:[%s6683_s3 + $0x90] ss:$8 sps:$4 sm:$0xff]   ;;  %v248_v56 = vlaneseq }
  0xed   :  { %v4688_v39 = vld [vmem:[%s6683_s3 + $0xa4] ss:$8 sps:$4 sm:$0xff]   ;;  %v4686_v40 = vld [vmem:[%s6683_s3 + $0xa0] ss:$8 sps:$4 sm:$0xff]   ;;  %v4691_v41 = vld [vmem:[%s6683_s3 + $0xb4] ss:$8 sps:$4 sm:$0xff]  }
  0xee   :  { %v4689_v42 = vld [vmem:[%s6683_s3 + $0xb0] ss:$8 sps:$4 sm:$0xff]   ;;  %v4694_v43 = vld [vmem:[%s6683_s3 + $0xc4] ss:$8 sps:$4 sm:$0xff]   ;;  %v4692_v44 = vld [vmem:[%s6683_s3 + $0xc0] ss:$8 sps:$4 sm:$0xff]  }
  0xef   :  { %1912 = vmatpush1.bf16.msra.mxu0 %v4680_v36  ;;  %v4697_v45 = vld [vmem:[%s6683_s3 + $0xd4] ss:$8 sps:$4 sm:$0xff]   ;;  %v4695_v46 = vld [vmem:[%s6683_s3 + $0xd0] ss:$8 sps:$4 sm:$0xff]   ;;  %v4700_v47 = vld [vmem:[%s6683_s3 + $0xe4] ss:$8 sps:$4 sm:$0xff]  }
  0xf0   :  { %1913 = vmatprep.subr.bf16.mxu0 %v4685_v37  ;;  %v4698_v48 = vld [vmem:[%s6683_s3 + $0xe0] ss:$8 sps:$4 sm:$0xff]   ;;  %v4703_v49 = vld [vmem:[%s6683_s3 + $0xf4] ss:$8 sps:$4 sm:$0xff]   ;;  %v4701_v50 = vld [vmem:[%s6683_s3 + $0xf0] ss:$8 sps:$4 sm:$0xff]  }
  0xf1   :  { %v4706_v51 = vld [vmem:[%s6683_s3 + $0x104] ss:$8 sps:$4 sm:$0xff]   ;;  %v4731_v52 = vld [vmem:[%s6684_s4] ss:$16 sps:$4 sm:$0xff]   ;;  %v5883_v57 = vshrl.u32 %v248_v56, 7  ;;  %v5899_v61 = vld [vmem:[%s6686_s6 + $0x18] sm:$0xff] }
  0xf2   :  { %v4733_v53 = vld [vmem:[%s6684_s4 + $0x4] ss:$16 sps:$4 sm:$0xff]   ;;  %v4734_v55 = vld [vmem:[%s6684_s4 + $0x20] ss:$16 sps:$4 sm:$0xff]   ;;  %v5894_v60 = vld [vmem:[%s6686_s6 + $0x8] sm:$0xff] }
  0xf3   :  { %1914 = vmatpush1.bf16.msra.mxu0 %v4683_v38  ;;  %v4736_v54 = vld [vmem:[%s6684_s4 + $0x24] ss:$16 sps:$4 sm:$0xff]   ;;  %2192 = vmatprep.subr.bf16.mxu1 %v4733_v53  ;;  %v250_v58 = vsub.s32 0, %v5883_v57  ;;  %v4704_v16 = vld [vmem:[%s6683_s3 + $0x100] ss:$8 sps:$4 sm:$0xff]  }
  0xf4   :  { %1915 = vmatprep.subr.bf16.mxu0 %v4688_v39  ;;  %2193 = vmatpush1.bf16.msra.mxu1 %v4731_v52  ;;  %v5889_v59 = vld [vmem:[%s6686_s6] sm:$0xff]  ;;  %v4709_v19 = vld [vmem:[%s6683_s3 + $0x114] ss:$8 sps:$4 sm:$0xff]   ;;  %v4707_v21 = vld [vmem:[%s6683_s3 + $0x110] ss:$8 sps:$4 sm:$0xff]  }
  0xf5   :  { %2194 = vmatprep.subr.bf16.mxu1 %v4736_v54  ;;  %v251_v62 = vrot.slane %v5889_v59, %v250_v58  ;;  %v255_v63 = vrot.slane %v5894_v60, %v250_v58  ;;  %v263_v0 = vrot.slane %v5899_v61, %v250_v58  ;;  %v4712_v22 = vld [vmem:[%s6683_s3 + $0x124] ss:$8 sps:$4 sm:$0xff]   ;;  %v4710_v23 = vld [vmem:[%s6683_s3 + $0x120] ss:$8 sps:$4 sm:$0xff]   ;;  %v4715_v24 = vld [vmem:[%s6683_s3 + $0x134] ss:$8 sps:$4 sm:$0xff]  }
  0xf6   :  { %v4713_v25 = vld [vmem:[%s6683_s3 + $0x130] ss:$8 sps:$4 sm:$0xff]   ;;  %v4718_v26 = vld [vmem:[%s6683_s3 + $0x144] ss:$8 sps:$4 sm:$0xff]   ;;  %v4716_v27 = vld [vmem:[%s6683_s3 + $0x140] ss:$8 sps:$4 sm:$0xff]  }
  0xf7   :  { %1916 = vmatpush1.bf16.msra.mxu0 %v4686_v40  ;;  %v4721_v28 = vld [vmem:[%s6683_s3 + $0x154] ss:$8 sps:$4 sm:$0xff]   ;;  %v4719_v29 = vld [vmem:[%s6683_s3 + $0x150] ss:$8 sps:$4 sm:$0xff]   ;;  %v4724_v30 = vld [vmem:[%s6683_s3 + $0x164] ss:$8 sps:$4 sm:$0xff]  }
  0xf8   :  { %1917 = vmatprep.subr.bf16.mxu0 %v4691_v41  ;;  %2195 = vmatpush1.bf16.msra.mxu1 %v4734_v55  ;;  %v5944_v31 = vld [vmem:[%s6686_s6 + $0x10] sm:$0xff]  ;;  %v4722_v32 = vld [vmem:[%s6683_s3 + $0x160] ss:$8 sps:$4 sm:$0xff]   ;;  %v4730_v37 = vld [vmem:[%s6683_s3 + $0x184] ss:$8 sps:$4 sm:$0xff]  }
  0xf9   :  { %v259_v33 = vrot.slane %v5944_v31, %v250_v58  ;;  %v4727_v34 = vld [vmem:[%s6683_s3 + $0x174] ss:$8 sps:$4 sm:$0xff]   ;;  %v4725_v35 = vld [vmem:[%s6683_s3 + $0x170] ss:$8 sps:$4 sm:$0xff]   ;;  %v4728_v38 = vld [vmem:[%s6683_s3 + $0x180] ss:$8 sps:$4 sm:$0xff]  }
  0xfa   :  { %v4739_v41 = vld [vmem:[%s6684_s4 + $0x44] ss:$16 sps:$4 sm:$0xff]   ;;  %v4752_v52 = vld [vmem:[%s6684_s4 + $0xe0] ss:$16 sps:$4 sm:$0xff]   ;;  %v4757_v53 = vld [vmem:[%s6684_s4 + $0xc] ss:$16 sps:$4 sm:$0xff]  }
  0xfb   :  { %1918 = vmatpush1.bf16.msra.mxu0 %v4689_v42  ;;  %v4737_v42 = vld [vmem:[%s6684_s4 + $0x40] ss:$16 sps:$4 sm:$0xff]   ;;  %2196 = vmatprep.subr.bf16.mxu1 %v4739_v41  ;;  %v4782_v54 = vld [vmem:[%s6685_s5 + $0x8] ss:$28 sps:$4 sm:$0xff]   ;;  %v4760_v41 = vld [vmem:[%s6684_s4 + $0x2c] ss:$16 sps:$4 sm:$0xff]  }
  0xfc   :  { %1919 = vmatprep.subr.bf16.mxu0 %v4694_v43  ;;  %2197 = vmatpush1.bf16.msra.mxu1 %v4737_v42  ;;  %v4742_v43 = vld [vmem:[%s6684_s4 + $0x64] ss:$16 sps:$4 sm:$0xff]   ;;  %v4784_v55 = vld [vmem:[%s6685_s5 + $0xc] ss:$28 sps:$4 sm:$0xff]   ;;  %v4788_v58 = vld [vmem:[%s6685_s5 + $0x40] ss:$28 sps:$4 sm:$0xff]  }
  0xfd   :  { %2198 = vmatprep.subr.bf16.mxu1 %v4742_v43  ;;  %v4790_v56 = vld [vmem:[%s6685_s5 + $0x44] ss:$28 sps:$4 sm:$0xff]   ;;  %v4758_v42 = vld [vmem:[%s6684_s4 + $0x28] ss:$16 sps:$4 sm:$0xff]   ;;  %v4763_v43 = vld [vmem:[%s6684_s4 + $0x4c] ss:$16 sps:$4 sm:$0xff]  }
  0xff   :  { %1920 = vmatpush1.bf16.msra.mxu0 %v4692_v44  ;;  %v4740_v44 = vld [vmem:[%s6684_s4 + $0x60] ss:$16 sps:$4 sm:$0xff]  }
 0x100   :  { %1921 = vmatprep.subr.bf16.mxu0 %v4697_v45  ;;  %2199 = vmatpush1.bf16.msra.mxu1 %v4740_v44  ;;  %v4745_v45 = vld [vmem:[%s6684_s4 + $0x84] ss:$16 sps:$4 sm:$0xff]   ;;  %v4761_v44 = vld [vmem:[%s6684_s4 + $0x48] ss:$16 sps:$4 sm:$0xff]  }
 0x101   :  { %2200 = vmatprep.subr.bf16.mxu1 %v4745_v45  ;;  %v4766_v45 = vld [vmem:[%s6684_s4 + $0x6c] ss:$16 sps:$4 sm:$0xff]  }
 0x103   :  { %1922 = vmatpush1.bf16.msra.mxu0 %v4695_v46  ;;  %v4743_v46 = vld [vmem:[%s6684_s4 + $0x80] ss:$16 sps:$4 sm:$0xff]  }
 0x104   :  { %1923 = vmatprep.subr.bf16.mxu0 %v4700_v47  ;;  %v4748_v47 = vld [vmem:[%s6684_s4 + $0xa4] ss:$16 sps:$4 sm:$0xff]   ;;  %2201 = vmatpush1.bf16.msra.mxu1 %v4743_v46  ;;  %v4764_v46 = vld [vmem:[%s6684_s4 + $0x68] ss:$16 sps:$4 sm:$0xff]  }
 0x105   :  { %2202 = vmatprep.subr.bf16.mxu1 %v4748_v47  ;;  %v4769_v47 = vld [vmem:[%s6684_s4 + $0x8c] ss:$16 sps:$4 sm:$0xff]  }
 0x107   :  { %1924 = vmatpush1.bf16.msra.mxu0 %v4698_v48  ;;  %v4746_v48 = vld [vmem:[%s6684_s4 + $0xa0] ss:$16 sps:$4 sm:$0xff]  }
 0x108   :  { %1925 = vmatprep.subr.bf16.mxu0 %v4703_v49  ;;  %v4751_v49 = vld [vmem:[%s6684_s4 + $0xc4] ss:$16 sps:$4 sm:$0xff]   ;;  %2203 = vmatpush1.bf16.msra.mxu1 %v4746_v48  ;;  %v4767_v48 = vld [vmem:[%s6684_s4 + $0x88] ss:$16 sps:$4 sm:$0xff]  }
 0x109   :  { %2204 = vmatprep.subr.bf16.mxu1 %v4751_v49  ;;  %v4772_v49 = vld [vmem:[%s6684_s4 + $0xac] ss:$16 sps:$4 sm:$0xff]  }
 0x10b   :  { %1926 = vmatpush1.bf16.msra.mxu0 %v4701_v50  ;;  %v4749_v50 = vld [vmem:[%s6684_s4 + $0xc0] ss:$16 sps:$4 sm:$0xff]  }
 0x10c   :  { %1936 = vmatprep.subr.bf16.mxu0 %v4706_v51  ;;  %v4754_v51 = vld [vmem:[%s6684_s4 + $0xe4] ss:$16 sps:$4 sm:$0xff]   ;;  %2205 = vmatpush1.bf16.msra.mxu1 %v4749_v50  ;;  %v4770_v50 = vld [vmem:[%s6684_s4 + $0xa8] ss:$16 sps:$4 sm:$0xff]  }
 0x10d   :  { %2206 = vmatprep.subr.bf16.mxu1 %v4754_v51  ;;  %v4775_v51 = vld [vmem:[%s6684_s4 + $0xcc] ss:$16 sps:$4 sm:$0xff]  }
 0x110   :  { %2207 = vmatpush1.bf16.msra.mxu1 %v4752_v52  ;;  %v4773_v52 = vld [vmem:[%s6684_s4 + $0xc8] ss:$16 sps:$4 sm:$0xff]  }
 0x111   :  { %2233 = vmatprep.subr.bf16.mxu1 %v4757_v53  ;;  %v4778_v53 = vld [vmem:[%s6684_s4 + $0xec] ss:$16 sps:$4 sm:$0xff]  }
 0x1a1   :  { %v1405_v1 = vpop.f32.mrb[0].mxu0  ;;  %v1569_v2 = vpop.f32.mrb[0].mxu1 }
 0x1a2   :  { %v4307_v3 = vadd.f32 %v1405_v1, %v251_v62  ;;  %v1407_v4 = vpop.f32.mrb[1].mxu0  ;;  %v1571_v5 = vpop.f32.mrb[1].mxu1  ;;  %v4309_v36 = vadd.f32 %v1569_v2, %v259_v33  ;;  %v4796_v62 = vld [vmem:[%s6685_s5 + $0x7c] ss:$28 sps:$4 sm:$0xff]   ;;  %v4800_v1 = vld [vmem:[%s6685_s5 + $0xb0] ss:$28 sps:$4 sm:$0xff]  }
 0x1a3   :  { %v4308_v6 = vadd.f32 %v1407_v4, %v255_v63  ;;  %v4310_v7 = vadd.f32 %v1571_v5, %v263_v0  ;;  %v1409_v8 = vpop.f32.mrb[2].mxu0  ;;  %v1573_v9 = vpop.f32.mrb[2].mxu1  ;;  %v4794_v63 = vld [vmem:[%s6685_s5 + $0x78] ss:$28 sps:$4 sm:$0xff]   ;;  %v4808_v2 = vld [vmem:[%s6685_s5 + $0xec] ss:$28 sps:$4 sm:$0xff]  }
 0x1a4   :  { %v1576_v10 = vmax.f32 %v4307_v3, 0.0  ;;  %v1410_v11 = vpop.f32.mrb[3].mxu0  ;;  %v1574_v12 = vpop.f32.mrb[3].mxu1  ;;  %v1578_v39 = vmax.f32 %v4309_v36, 0.0  ;;  %v4802_v0 = vld [vmem:[%s6685_s5 + $0xb4] ss:$28 sps:$4 sm:$0xff]  }
 0x1a5   :  { %v1577_v13 = vmax.f32 %v4308_v6, 0.0  ;;  %v1579_v14 = vmax.f32 %v4310_v7, 0.0  ;;  %v4806_v3 = vld [vmem:[%s6685_s5 + $0xe8] ss:$28 sps:$4 sm:$0xff]   ;;  %v4812_v5 = vld [vmem:[%s6685_s5 + $0x120] ss:$28 sps:$4 sm:$0xff]  }
 0x1a6   :  { %v1580_v18 = vpack.c.bf16 %v1576_v10, %v1576_v10  ;;  %v1582_v40 = vpack.c.bf16 %v1578_v39, %v1578_v39  ;;  %v4814_v4 = vld [vmem:[%s6685_s5 + $0x124] ss:$28 sps:$4 sm:$0xff]   ;;  %v4820_v6 = vld [vmem:[%s6685_s5 + $0x15c] ss:$28 sps:$4 sm:$0xff]   ;;  %v4826_v8 = vld [vmem:[%s6685_s5 + $0x194] ss:$28 sps:$4 sm:$0xff]  }
 0x1a7   :  { %v1581_v15 = vpack.c.bf16 %v1577_v13, %v1577_v13  ;;  %v1583_v20 = vpack.c.bf16 %v1579_v14, %v1579_v14  ;;  %v4818_v7 = vld [vmem:[%s6685_s5 + $0x158] ss:$28 sps:$4 sm:$0xff]   ;;  %v4824_v9 = vld [vmem:[%s6685_s5 + $0x190] ss:$28 sps:$4 sm:$0xff]   ;;  %v4830_v11 = vld [vmem:[%s6685_s5 + $0x1c8] ss:$28 sps:$4 sm:$0xff]  }
 0x1a8   :  { %v4832_v10 = vld [vmem:[%s6685_s5 + $0x1cc] ss:$28 sps:$4 sm:$0xff]   ;;  %v4838_v12 = vld [vmem:[%s6685_s5 + $0x204] ss:$28 sps:$4 sm:$0xff]   ;;  %v4844_v14 = vld [vmem:[%s6685_s5 + $0x23c] ss:$28 sps:$4 sm:$0xff]  }
 0x1a9   :  { %1927 = vmatprep.mubr.bf16.mxu0 %v1581_v15  ;;  %v4836_v13 = vld [vmem:[%s6685_s5 + $0x200] ss:$28 sps:$4 sm:$0xff]   ;;  %v4842_v15 = vld [vmem:[%s6685_s5 + $0x238] ss:$28 sps:$4 sm:$0xff]  }
 0x1aa   :  { %1928 = vmatmul.mubr.bf16.vlgmr.msra.gmra.mrb[4].mxu0 %v1580_v18  ;;  %v4848_v18 = vld [vmem:[%s6685_s5 + $0x270] ss:$28 sps:$4 sm:$0xff]   ;;  %v4755_v39 = vld [vmem:[%s6684_s4 + $0x8] ss:$16 sps:$4 sm:$0xff]  }
 0x1ab   :  { %1937 = vmatpush1.bf16.msra.mxu0 %v4704_v16  ;;  %4066 = vmatprep.mubr.msk.bf16.mxu0 %vm1244_vm0, %v1583_v20  ;;  %v4850_v16 = vld [vmem:[%s6685_s5 + $0x274] ss:$28 sps:$4 sm:$0xff]   ;;  %v4854_v20 = vld [vmem:[%s6685_s5 + $0x2a8] ss:$28 sps:$4 sm:$0xff]  }
 0x1ac   :  { %1938 = vmatprep.subr.bf16.mxu0 %v4709_v19  ;;  %v4856_v19 = vld [vmem:[%s6685_s5 + $0x2ac] ss:$28 sps:$4 sm:$0xff]  }
 0x1af   :  { %1939 = vmatpush1.bf16.msra.mxu0 %v4707_v21  ;;  %v4862_v21 = vld [vmem:[%s6685_s5 + $0x2e4] ss:$28 sps:$4 sm:$0xff]  }
 0x1b0   :  { %1940 = vmatprep.subr.bf16.mxu0 %v4712_v22  ;;  %v4860_v22 = vld [vmem:[%s6685_s5 + $0x2e0] ss:$28 sps:$4 sm:$0xff]  }
 0x1b3   :  { %1941 = vmatpush1.bf16.msra.mxu0 %v4710_v23  ;;  %v1636_v23 = vsub.s32 1, %v5883_v57 }
 0x1b4   :  { %1942 = vmatprep.subr.bf16.mxu0 %v4715_v24 }
 0x1b5   :  { %v1637_v24 = vrot.slane %v5889_v59, %v1636_v23 }
 0x1b7   :  { %1943 = vmatpush1.bf16.msra.mxu0 %v4713_v25  ;;  %v1641_v25 = vrot.slane %v5894_v60, %v1636_v23  ;;  %v4857_v23 = vld [vmem:[%s6685_s5 + $0x2d8] ss:$28 sps:$4 sm:$0xff]  }
 0x1b8   :  { %1944 = vmatprep.subr.bf16.mxu0 %v4718_v26 }
 0x1bb   :  { %1945 = vmatpush1.bf16.msra.mxu0 %v4716_v27 }
 0x1bc   :  { %1946 = vmatprep.subr.bf16.mxu0 %v4721_v28 }
 0x1bf   :  { %1947 = vmatpush1.bf16.msra.mxu0 %v4719_v29 }
 0x1c0   :  { %1948 = vmatprep.subr.bf16.mxu0 %v4724_v30 }
 0x1c3   :  { %1949 = vmatpush1.bf16.msra.mxu0 %v4722_v32 }
 0x1c4   :  { %1950 = vmatprep.subr.bf16.mxu0 %v4727_v34 }
 0x1c7   :  { %1951 = vmatpush1.bf16.msra.mxu0 %v4725_v35  ;;  %v1980_v35 = vld [vmem:[%s6681_s1] sm:$0xff]  ;;  %s5111_s1 = smov [#allocation4]  }
 0x1c8   :  { %1952 = vmatprep.subr.bf16.mxu0 %v4730_v37  ;;  %s3806_s23 = sshll.u32 %s5111_s1, 4  ;;  %s3807_s23 = int_to_ptr.vmem [resolvable:$true] %s3806_s23 }
 0x1c9   :  { %s5062_s24 = scalar_lea.vmem %s3807_s23, 256  ;;  %p5067_p1 = scmp.lt.s32.totalorder %s3807_s23, %s3807_s23 }
 0x1ca   :  { %p5063_p0 = scmp.ne.s32.totalorder %s3807_s23, %s5062_s24  ;;  %p5068_p2 = scmp.lt.s32.totalorder %s5062_s24, %s5062_s24 }
 0x1cb   :  { %1953 = vmatpush1.bf16.msra.mxu0 %v4728_v38 }
 0x1cc   :  { %3495 = vmatprep.subr.bf16.mxu0 %v4784_v55  ;;  %v4781_v55 = vld [vmem:[%s6685_s5 + $0x4] ss:$28 sps:$4 sm:$0xff]   ;;  %p5069_p3 = por %p5068_p2, %p5067_p1 }
 0x1ce   :  { %1969 = vmatmul.mubr.bf16.vlgmr.msra.gmra.mrb[4].mxu0 %v1582_v40  ;;  %p5070_p4 = pnand %p5069_p3, %p5063_p0 }
 0x1cf   :  { %3496 = vmatpush1.bf16.msra.mxu0 %v4782_v54  ;;  %v4776_v54 = vld [vmem:[%s6684_s4 + $0xe8] ss:$16 sps:$4 sm:$0xff]  }
 0x1d0   :  { %3497 = vmatprep.subr.bf16.mxu0 %v4790_v56  ;;  %v4779_v56 = vld [vmem:[%s6685_s5] ss:$28 sps:$4 sm:$0xff]  }
 0x1d3   :  { %3498 = vmatpush1.bf16.msra.mxu0 %v4788_v58  ;;  %v4787_v58 = vld [vmem:[%s6685_s5 + $0x3c] ss:$28 sps:$4 sm:$0xff]  }
 0x1d4   :  { %3499 = vmatprep.subr.bf16.mxu0 %v4796_v62  ;;  %v4785_v62 = vld [vmem:[%s6685_s5 + $0x38] ss:$28 sps:$4 sm:$0xff]  }
 0x1d7   :  { %3500 = vmatpush1.bf16.msra.mxu0 %v4794_v63  ;;  %v4793_v63 = vld [vmem:[%s6685_s5 + $0x74] ss:$28 sps:$4 sm:$0xff]  }
 0x1d8   :  { %3501 = vmatprep.subr.bf16.mxu0 %v4802_v0  ;;  %v4791_v0 = vld [vmem:[%s6685_s5 + $0x70] ss:$28 sps:$4 sm:$0xff]  }
 0x1db   :  { %3502 = vmatpush1.bf16.msra.mxu0 %v4800_v1  ;;  %v4799_v1 = vld [vmem:[%s6685_s5 + $0xac] ss:$28 sps:$4 sm:$0xff]  }
 0x1dc   :  { %3503 = vmatprep.subr.bf16.mxu0 %v4808_v2  ;;  %v4797_v2 = vld [vmem:[%s6685_s5 + $0xa8] ss:$28 sps:$4 sm:$0xff]  }
 0x1df   :  { %3504 = vmatpush1.bf16.msra.mxu0 %v4806_v3  ;;  %v4805_v3 = vld [vmem:[%s6685_s5 + $0xe4] ss:$28 sps:$4 sm:$0xff]  }
 0x1e0   :  { %3505 = vmatprep.subr.bf16.mxu0 %v4814_v4  ;;  %v4803_v4 = vld [vmem:[%s6685_s5 + $0xe0] ss:$28 sps:$4 sm:$0xff]  }
 0x1e3   :  { %3506 = vmatpush1.bf16.msra.mxu0 %v4812_v5  ;;  %v4811_v5 = vld [vmem:[%s6685_s5 + $0x11c] ss:$28 sps:$4 sm:$0xff]  }
 0x1e4   :  { %3507 = vmatprep.subr.bf16.mxu0 %v4820_v6  ;;  %v4809_v6 = vld [vmem:[%s6685_s5 + $0x118] ss:$28 sps:$4 sm:$0xff]  }
 0x1e7   :  { %3508 = vmatpush1.bf16.msra.mxu0 %v4818_v7  ;;  %v4817_v7 = vld [vmem:[%s6685_s5 + $0x154] ss:$28 sps:$4 sm:$0xff]  }
 0x1e8   :  { %3509 = vmatprep.subr.bf16.mxu0 %v4826_v8  ;;  %v4815_v8 = vld [vmem:[%s6685_s5 + $0x150] ss:$28 sps:$4 sm:$0xff]  }
 0x1eb   :  { %3510 = vmatpush1.bf16.msra.mxu0 %v4824_v9  ;;  %v4823_v9 = vld [vmem:[%s6685_s5 + $0x18c] ss:$28 sps:$4 sm:$0xff]  }
 0x1ec   :  { %3511 = vmatprep.subr.bf16.mxu0 %v4832_v10  ;;  %v4821_v10 = vld [vmem:[%s6685_s5 + $0x188] ss:$28 sps:$4 sm:$0xff]  }
 0x1ef   :  { %3512 = vmatpush1.bf16.msra.mxu0 %v4830_v11  ;;  %v4829_v11 = vld [vmem:[%s6685_s5 + $0x1c4] ss:$28 sps:$4 sm:$0xff]  }
 0x1f0   :  { %3513 = vmatprep.subr.bf16.mxu0 %v4838_v12  ;;  %v4827_v12 = vld [vmem:[%s6685_s5 + $0x1c0] ss:$28 sps:$4 sm:$0xff]  }
 0x1f3   :  { %3514 = vmatpush1.bf16.msra.mxu0 %v4836_v13  ;;  %v4835_v13 = vld [vmem:[%s6685_s5 + $0x1fc] ss:$28 sps:$4 sm:$0xff]  }
 0x1f4   :  { %3515 = vmatprep.subr.bf16.mxu0 %v4844_v14  ;;  %v4833_v14 = vld [vmem:[%s6685_s5 + $0x1f8] ss:$28 sps:$4 sm:$0xff]  }
 0x1f7   :  { %3516 = vmatpush1.bf16.msra.mxu0 %v4842_v15  ;;  %v4841_v15 = vld [vmem:[%s6685_s5 + $0x234] ss:$28 sps:$4 sm:$0xff]  }
 0x1f8   :  { %3517 = vmatprep.subr.bf16.mxu0 %v4850_v16  ;;  %v4839_v16 = vld [vmem:[%s6685_s5 + $0x230] ss:$28 sps:$4 sm:$0xff]  }
 0x1fb   :  { %3518 = vmatpush1.bf16.msra.mxu0 %v4848_v18  ;;  %v4847_v18 = vld [vmem:[%s6685_s5 + $0x26c] ss:$28 sps:$4 sm:$0xff]  }
 0x1fc   :  { %3519 = vmatprep.subr.bf16.mxu0 %v4856_v19  ;;  %v4845_v19 = vld [vmem:[%s6685_s5 + $0x268] ss:$28 sps:$4 sm:$0xff]  }
 0x1ff   :  { %3520 = vmatpush1.bf16.msra.mxu0 %v4854_v20  ;;  %v4853_v20 = vld [vmem:[%s6685_s5 + $0x2a4] ss:$28 sps:$4 sm:$0xff]  }
 0x200   :  { %3521 = vmatprep.subr.bf16.mxu0 %v4862_v21  ;;  %v4851_v21 = vld [vmem:[%s6685_s5 + $0x2a0] ss:$28 sps:$4 sm:$0xff]  }
 0x203   :  { %3522 = vmatpush1.bf16.msra.mxu0 %v4860_v22  ;;  %v4859_v22 = vld [vmem:[%s6685_s5 + $0x2dc] ss:$28 sps:$4 sm:$0xff]  }
 0x2a1   :  { %v1970_v26 = vpop.f32.mrb[4].mxu0 }
 0x2a2   :  { %v4311_v27 = vadd.f32 %v1970_v26, %v1637_v24  ;;  %v1972_v28 = vpop.f32.mrb[5].mxu0  ;;  %v4865_v24 = vld [vmem:[%s6685_s5 + $0x314] ss:$28 sps:$4 sm:$0xff]  }
 0x2a3   :  { %v4312_v29 = vadd.f32 %v1972_v28, %v1641_v25  ;;  %v1974_v30 = vpop.f32.mrb[6].mxu0  ;;  %v4868_v25 = vld [vmem:[%s6685_s5 + $0x31c] ss:$28 sps:$4 sm:$0xff]   ;;  %v4871_v28 = vld [vmem:[%s6685_s5 + $0x34c] ss:$28 sps:$4 sm:$0xff]  }
 0x2a4   :  { %3788 = vst [vmem:[#allocation4] sm:$0xff] %v4311_v27  ;;  %v1975_v32 = vpop.f32.mrb[7].mxu0  ;;  %v4866_v26 = vld [vmem:[%s6685_s5 + $0x318] ss:$28 sps:$4 sm:$0xff]   ;;  %3523 = vmatprep.subr.bf16.mxu0 %v4868_v25  ;;  %v4872_v30 = vld [vmem:[%s6685_s5 + $0x350] ss:$28 sps:$4 sm:$0xff]  }
 0x2a5   :  { %v1977_v33 = vmul.f32 0.5, %v4312_v29  ;;  %3789 = vst [vmem:[#allocation4 + $0x8] sm:$0xff] %v4312_v29  ;;  %3524 = vmatpush1.bf16.msra.mxu0 %v4866_v26  ;;  %v4874_v29 = vld [vmem:[%s6685_s5 + $0x354] ss:$28 sps:$4 sm:$0xff]   ;;  %v4869_v32 = vld [vmem:[%s6685_s5 + $0x348] ss:$28 sps:$4 sm:$0xff]  }
 0x2a6   :  { %3525 = vmatprep.subr.bf16.mxu0 %v4874_v29  ;;  %v4928_v25 = vld [vmem:[%s6685_s5 + $0x54c] ss:$28 sps:$4 sm:$0xff]  }
 0x2a7   :  { %v1978_v34 = vmul.f32 1.442695, %v1977_v33  ;;  %v4877_v33 = vld [vmem:[%s6685_s5 + $0x384] ss:$28 sps:$4 sm:$0xff]  }
 0x2a8   :  { %v4926_v29 = vld [vmem:[%s6685_s5 + $0x548] ss:$28 sps:$4 sm:$0xff]  }
 0x2a9   :  { %5029 = vpow2.f32 %v1978_v34  ;;  %3526 = vmatpush1.bf16.msra.mxu0 %v4872_v30  ;;  %v4880_v34 = vld [vmem:[%s6685_s5 + $0x38c] ss:$28 sps:$4 sm:$0xff]  }
 0x2aa   :  { %3536 = vmatprep.subr.bf16.mxu0 %v4880_v34  ;;  %v4929_v34 = vld [vmem:[%s6685_s5 + $0x10] ss:$28 sps:$4 sm:$0xff]  }
 0x2b3   :  { %v5030_v36 = vpop.eup %5029 }
 0x2b4   :  { %v1981_v37 = vmul.f32 %v5030_v36, %v1980_v35  ;;  %v6252_v35 = vsub.s32 2, %v5883_v57 }
 0x2b6   :  { %v1982_v38 = vadd.f32 %v4311_v27, %v1981_v37  ;;  %v4863_v27 = vld [vmem:[%s6685_s5 + $0x310] ss:$28 sps:$4 sm:$0xff]   ;;  %v2019_v36 = vrot.slane %v5889_v59, %v6252_v35  ;;  %v2023_v37 = vrot.slane %v5894_v60, %v6252_v35  ;;  %v4878_v59 = vld [vmem:[%s6685_s5 + $0x388] ss:$28 sps:$4 sm:$0xff]   ;;  %v4883_v60 = vld [vmem:[%s6685_s5 + $0x3bc] ss:$28 sps:$4 sm:$0xff]  }
 0x2b8   :  { %v1983_v40 = vpack.c.bf16 %v1982_v38, %v1982_v38 }
 0x2ba   :  { %2225 = vmatmul.mubr.bf16.vlgmr.msra.gmra.mrb[4].mxu1 %v1983_v40 }
 0x2bb   :  { %2234 = vmatpush1.bf16.msra.mxu1 %v4755_v39  ;;  %2265 = vmatprep.mubr.bf16.mxu1 %v5110_v17 }
 0x2bc   :  { %2235 = vmatprep.subr.bf16.mxu1 %v4760_v41 }
 0x2bf   :  { %2236 = vmatpush1.bf16.msra.mxu1 %v4758_v42 }
 0x2c0   :  { %2237 = vmatprep.subr.bf16.mxu1 %v4763_v43 }
 0x2c3   :  { %2238 = vmatpush1.bf16.msra.mxu1 %v4761_v44 }
 0x2c4   :  { %2239 = vmatprep.subr.bf16.mxu1 %v4766_v45 }
 0x2c7   :  { %2240 = vmatpush1.bf16.msra.mxu1 %v4764_v46 }
 0x2c8   :  { %2241 = vmatprep.subr.bf16.mxu1 %v4769_v47  ;;  %v4875_v47 = vld [vmem:[%s6685_s5 + $0x380] ss:$28 sps:$4 sm:$0xff]  }
 0x2cb   :  { %2242 = vmatpush1.bf16.msra.mxu1 %v4767_v48 }
 0x2cc   :  { %2243 = vmatprep.subr.bf16.mxu1 %v4772_v49  ;;  %v4886_v49 = vld [vmem:[%s6685_s5 + $0x3c4] ss:$28 sps:$4 sm:$0xff]  }
 0x2cf   :  { %2244 = vmatpush1.bf16.msra.mxu1 %v4770_v50  ;;  %v4881_v50 = vld [vmem:[%s6685_s5 + $0x3b8] ss:$28 sps:$4 sm:$0xff]  }
 0x2d0   :  { %2245 = vmatprep.subr.bf16.mxu1 %v4775_v51  ;;  %v4884_v51 = vld [vmem:[%s6685_s5 + $0x3c0] ss:$28 sps:$4 sm:$0xff]  }
 0x2d3   :  { %2246 = vmatpush1.bf16.msra.mxu1 %v4773_v52  ;;  %v4889_v52 = vld [vmem:[%s6685_s5 + $0x3f4] ss:$28 sps:$4 sm:$0xff]  }
 0x2d4   :  { %2247 = vmatprep.subr.bf16.mxu1 %v4778_v53  ;;  %v4892_v53 = vld [vmem:[%s6685_s5 + $0x3fc] ss:$28 sps:$4 sm:$0xff]  }
 0x2d7   :  { %2248 = vmatpush1.bf16.msra.mxu1 %v4776_v54  ;;  %v4887_v54 = vld [vmem:[%s6685_s5 + $0x3f0] ss:$28 sps:$4 sm:$0xff]  }
 0x2d8   :  { %3413 = vmatprep.subr.bf16.mxu1 %v4781_v55  ;;  %v4890_v55 = vld [vmem:[%s6685_s5 + $0x3f8] ss:$28 sps:$4 sm:$0xff]  }
 0x2da   :  { %2266 = vmatmul.mubr.bf16.vlgmr.msra.gmra.mrb[8].mxu1 %v1983_v40 }
 0x2db   :  { %3414 = vmatpush1.bf16.msra.mxu1 %v4779_v56  ;;  %v4895_v56 = vld [vmem:[%s6685_s5 + $0x42c] ss:$28 sps:$4 sm:$0xff]  }
 0x2dc   :  { %3415 = vmatprep.subr.bf16.mxu1 %v4787_v58  ;;  %v4898_v58 = vld [vmem:[%s6685_s5 + $0x434] ss:$28 sps:$4 sm:$0xff]  }
 0x2df   :  { %3416 = vmatpush1.bf16.msra.mxu1 %v4785_v62  ;;  %v4893_v62 = vld [vmem:[%s6685_s5 + $0x428] ss:$28 sps:$4 sm:$0xff]  }
 0x2e0   :  { %3417 = vmatprep.subr.bf16.mxu1 %v4793_v63  ;;  %v4896_v63 = vld [vmem:[%s6685_s5 + $0x430] ss:$28 sps:$4 sm:$0xff]  }
 0x2e3   :  { %3418 = vmatpush1.bf16.msra.mxu1 %v4791_v0  ;;  %v4901_v0 = vld [vmem:[%s6685_s5 + $0x464] ss:$28 sps:$4 sm:$0xff]  }
 0x2e4   :  { %3419 = vmatprep.subr.bf16.mxu1 %v4799_v1  ;;  %v4904_v1 = vld [vmem:[%s6685_s5 + $0x46c] ss:$28 sps:$4 sm:$0xff]  }
 0x2e7   :  { %3420 = vmatpush1.bf16.msra.mxu1 %v4797_v2  ;;  %v4899_v2 = vld [vmem:[%s6685_s5 + $0x460] ss:$28 sps:$4 sm:$0xff]  }
 0x2e8   :  { %3421 = vmatprep.subr.bf16.mxu1 %v4805_v3  ;;  %v4902_v3 = vld [vmem:[%s6685_s5 + $0x468] ss:$28 sps:$4 sm:$0xff]  }
 0x2eb   :  { %3422 = vmatpush1.bf16.msra.mxu1 %v4803_v4  ;;  %v4907_v4 = vld [vmem:[%s6685_s5 + $0x49c] ss:$28 sps:$4 sm:$0xff]  }
 0x2ec   :  { %3423 = vmatprep.subr.bf16.mxu1 %v4811_v5  ;;  %v4910_v5 = vld [vmem:[%s6685_s5 + $0x4a4] ss:$28 sps:$4 sm:$0xff]  }
 0x2ef   :  { %3424 = vmatpush1.bf16.msra.mxu1 %v4809_v6  ;;  %v4905_v6 = vld [vmem:[%s6685_s5 + $0x498] ss:$28 sps:$4 sm:$0xff]  }
 0x2f0   :  { %3425 = vmatprep.subr.bf16.mxu1 %v4817_v7  ;;  %v4908_v7 = vld [vmem:[%s6685_s5 + $0x4a0] ss:$28 sps:$4 sm:$0xff]  }
 0x2f3   :  { %3426 = vmatpush1.bf16.msra.mxu1 %v4815_v8  ;;  %v4913_v8 = vld [vmem:[%s6685_s5 + $0x4d4] ss:$28 sps:$4 sm:$0xff]  }
 0x2f4   :  { %3427 = vmatprep.subr.bf16.mxu1 %v4823_v9  ;;  %v4916_v9 = vld [vmem:[%s6685_s5 + $0x4dc] ss:$28 sps:$4 sm:$0xff]  }
 0x2f7   :  { %3428 = vmatpush1.bf16.msra.mxu1 %v4821_v10  ;;  %v2031_v10 = vrot.slane %v5899_v61, %v6252_v35  ;;  %v4922_v61 = vld [vmem:[%s6685_s5 + $0x514] ss:$28 sps:$4 sm:$0xff]  }
 0x2f8   :  { %3429 = vmatprep.subr.bf16.mxu1 %v4829_v11  ;;  %v4911_v11 = vld [vmem:[%s6685_s5 + $0x4d0] ss:$28 sps:$4 sm:$0xff]  }
 0x2fb   :  { %3430 = vmatpush1.bf16.msra.mxu1 %v4827_v12  ;;  %v4914_v12 = vld [vmem:[%s6685_s5 + $0x4d8] ss:$28 sps:$4 sm:$0xff]  }
 0x2fc   :  { %3431 = vmatprep.subr.bf16.mxu1 %v4835_v13  ;;  %v2027_v13 = vrot.slane %v5944_v31, %v6252_v35 }
 0x2ff   :  { %3432 = vmatpush1.bf16.msra.mxu1 %v4833_v14  ;;  %v4919_v14 = vld [vmem:[%s6685_s5 + $0x50c] ss:$28 sps:$4 sm:$0xff]  }
 0x300   :  { %3433 = vmatprep.subr.bf16.mxu1 %v4841_v15 }
 0x303   :  { %3434 = vmatpush1.bf16.msra.mxu1 %v4839_v16 }
 0x304   :  { %3435 = vmatprep.subr.bf16.mxu1 %v4847_v18 }
 0x307   :  { %3436 = vmatpush1.bf16.msra.mxu1 %v4845_v19 }
 0x308   :  { %3437 = vmatprep.subr.bf16.mxu1 %v4853_v20  ;;  %v4917_v20 = vld [vmem:[%s6685_s5 + $0x508] ss:$28 sps:$4 sm:$0xff]  }
 0x30b   :  { %3438 = vmatpush1.bf16.msra.mxu1 %v4851_v21  ;;  %v4920_v21 = vld [vmem:[%s6685_s5 + $0x510] ss:$28 sps:$4 sm:$0xff]  }
 0x30c   :  { %3439 = vmatprep.subr.bf16.mxu1 %v4859_v22 }
 0x30f   :  { %3440 = vmatpush1.bf16.msra.mxu1 %v4857_v23 }
 0x310   :  { %3441 = vmatprep.subr.bf16.mxu1 %v4865_v24  ;;  %v4925_v24 = vld [vmem:[%s6685_s5 + $0x544] ss:$28 sps:$4 sm:$0xff]  }
 0x313   :  { %3442 = vmatpush1.bf16.msra.mxu1 %v4863_v27 }
 0x314   :  { %3443 = vmatprep.subr.bf16.mxu1 %v4871_v28  ;;  %v4923_v28 = vld [vmem:[%s6685_s5 + $0x540] ss:$28 sps:$4 sm:$0xff]  }
 0x317   :  { %3444 = vmatpush1.bf16.msra.mxu1 %v4869_v32  ;;  %v4931_v32 = vld [vmem:[%s6685_s5 + $0x14] ss:$28 sps:$4 sm:$0xff]  }
 0x318   :  { %3454 = vmatprep.subr.bf16.mxu1 %v4877_v33  ;;  %v4932_v33 = vld [vmem:[%s6685_s5 + $0x1d8] ss:$28 sps:$4 sm:$0xff]  }
 0x38d   :  { %v2226_v38 = vpop.f32.mrb[4].mxu1 }
 0x38e   :  { %v2227_v39 = vadd.f32 %v2226_v38, %v2019_v36  ;;  %v2228_v40 = vpop.f32.mrb[5].mxu1  ;;  %v4933_v36 = vld [vmem:[%s6685_s5 + $0x18] ss:$28 sps:$4 sm:$0xff]   ;;  %v4937_v38 = vld [vmem:[%s6685_s5 + $0x210] ss:$28 sps:$4 sm:$0xff]  }
 0x38f   :  { %v2229_v41 = vadd.f32 %v2228_v40, %v2023_v37  ;;  %v2230_v42 = vpop.f32.mrb[6].mxu1  ;;  %v4936_v37 = vld [vmem:[%s6685_s5 + $0x4c] ss:$28 sps:$4 sm:$0xff]  }
 0x390   :  { %v2274_v43 = vmax.f32 %v2227_v39, 0.0  ;;  %v2231_v44 = vpop.f32.mrb[7].mxu1  ;;  %v4934_v39 = vld [vmem:[%s6685_s5 + $0x48] ss:$28 sps:$4 sm:$0xff]   ;;  %v4938_v40 = vld [vmem:[%s6685_s5 + $0x50] ss:$28 sps:$4 sm:$0xff]  }
 0x391   :  { %v2275_v45 = vmax.f32 %v2229_v41, 0.0  ;;  %v4941_v41 = vld [vmem:[%s6685_s5 + $0x84] ss:$28 sps:$4 sm:$0xff]  }
 0x392   :  { %v6266_v48 = vpack.c.bf16 %v2274_v43, %v2274_v43  ;;  %v4942_v42 = vld [vmem:[%s6685_s5 + $0x248] ss:$28 sps:$4 sm:$0xff]   ;;  %v4939_v43 = vld [vmem:[%s6685_s5 + $0x80] ss:$28 sps:$4 sm:$0xff]  }
 0x393   :  { %v6258_v46 = vpack.c.bf16 %v2275_v45, %v2275_v45  ;;  %v4943_v44 = vld [vmem:[%s6685_s5 + $0x88] ss:$28 sps:$4 sm:$0xff]   ;;  %v4946_v45 = vld [vmem:[%s6685_s5 + $0xbc] ss:$28 sps:$4 sm:$0xff]  }
 0x395   :  { %3445 = vmatprep.mubr.bf16.mxu1 %v6258_v46  ;;  %3527 = vmatprep.mubr.bf16.mxu0 %v6258_v46 }
 0x396   :  { %3446 = vmatmul.mubr.bf16.vlgmr.msra.gmra.mrb[12].mxu1 %v6266_v48  ;;  %3528 = vmatmul.mubr.bf16.vlgmr.msra.gmra.mrb[8].mxu0 %v6266_v48 }
 0x397   :  { %3455 = vmatpush1.bf16.msra.mxu1 %v4875_v47  ;;  %3537 = vmatpush1.bf16.msra.mxu0 %v4878_v59  ;;  %v4944_v47 = vld [vmem:[%s6685_s5 + $0xb8] ss:$28 sps:$4 sm:$0xff]   ;;  %v4948_v59 = vld [vmem:[%s6685_s5 + $0xc0] ss:$28 sps:$4 sm:$0xff]  }
 0x398   :  { %3456 = vmatprep.subr.bf16.mxu1 %v4883_v60  ;;  %3538 = vmatprep.subr.bf16.mxu0 %v4886_v49  ;;  %v4951_v60 = vld [vmem:[%s6685_s5 + $0xf4] ss:$28 sps:$4 sm:$0xff]  }
 0x399   :  { %v4952_v49 = vld [vmem:[%s6685_s5 + $0x2b8] ss:$28 sps:$4 sm:$0xff]  }
 0x39b   :  { %3457 = vmatpush1.bf16.msra.mxu1 %v4881_v50  ;;  %3539 = vmatpush1.bf16.msra.mxu0 %v4884_v51  ;;  %v4949_v50 = vld [vmem:[%s6685_s5 + $0xf0] ss:$28 sps:$4 sm:$0xff]   ;;  %v4953_v51 = vld [vmem:[%s6685_s5 + $0xf8] ss:$28 sps:$4 sm:$0xff]  }
 0x39c   :  { %3458 = vmatprep.subr.bf16.mxu1 %v4889_v52  ;;  %3540 = vmatprep.subr.bf16.mxu0 %v4892_v53  ;;  %v4956_v52 = vld [vmem:[%s6685_s5 + $0x12c] ss:$28 sps:$4 sm:$0xff]  }
 0x39d   :  { %v4957_v53 = vld [vmem:[%s6685_s5 + $0x2f0] ss:$28 sps:$4 sm:$0xff]  }
 0x39f   :  { %3459 = vmatpush1.bf16.msra.mxu1 %v4887_v54  ;;  %3541 = vmatpush1.bf16.msra.mxu0 %v4890_v55  ;;  %v4954_v54 = vld [vmem:[%s6685_s5 + $0x128] ss:$28 sps:$4 sm:$0xff]   ;;  %v4958_v55 = vld [vmem:[%s6685_s5 + $0x130] ss:$28 sps:$4 sm:$0xff]  }
 0x3a0   :  { %3460 = vmatprep.subr.bf16.mxu1 %v4895_v56  ;;  %3542 = vmatprep.subr.bf16.mxu0 %v4898_v58  ;;  %v4961_v56 = vld [vmem:[%s6685_s5 + $0x164] ss:$28 sps:$4 sm:$0xff]  }
 0x3a1   :  { %v4962_v58 = vld [vmem:[%s6685_s5 + $0x328] ss:$28 sps:$4 sm:$0xff]  }
 0x3a3   :  { %3461 = vmatpush1.bf16.msra.mxu1 %v4893_v62  ;;  %3543 = vmatpush1.bf16.msra.mxu0 %v4896_v63  ;;  %v4959_v62 = vld [vmem:[%s6685_s5 + $0x160] ss:$28 sps:$4 sm:$0xff]   ;;  %v4963_v63 = vld [vmem:[%s6685_s5 + $0x168] ss:$28 sps:$4 sm:$0xff]  }
 0x3a4   :  { %3462 = vmatprep.subr.bf16.mxu1 %v4901_v0  ;;  %3544 = vmatprep.subr.bf16.mxu0 %v4904_v1  ;;  %v4966_v0 = vld [vmem:[%s6685_s5 + $0x19c] ss:$28 sps:$4 sm:$0xff]  }
 0x3a5   :  { %v4967_v1 = vld [vmem:[%s6685_s5 + $0x360] ss:$28 sps:$4 sm:$0xff]  }
 0x3a7   :  { %3463 = vmatpush1.bf16.msra.mxu1 %v4899_v2  ;;  %3545 = vmatpush1.bf16.msra.mxu0 %v4902_v3  ;;  %v4964_v2 = vld [vmem:[%s6685_s5 + $0x198] ss:$28 sps:$4 sm:$0xff]   ;;  %v4968_v3 = vld [vmem:[%s6685_s5 + $0x1a0] ss:$28 sps:$4 sm:$0xff]  }
 0x3a8   :  { %3464 = vmatprep.subr.bf16.mxu1 %v4907_v4  ;;  %3546 = vmatprep.subr.bf16.mxu0 %v4910_v5  ;;  %v4971_v4 = vld [vmem:[%s6685_s5 + $0x1d4] ss:$28 sps:$4 sm:$0xff]  }
 0x3a9   :  { %v4969_v5 = vld [vmem:[%s6685_s5 + $0x1d0] ss:$28 sps:$4 sm:$0xff]  }
 0x3ab   :  { %3465 = vmatpush1.bf16.msra.mxu1 %v4905_v6  ;;  %3547 = vmatpush1.bf16.msra.mxu0 %v4908_v7  ;;  %v4972_v6 = vld [vmem:[%s6685_s5 + $0x398] ss:$28 sps:$4 sm:$0xff]   ;;  %v4975_v7 = vld [vmem:[%s6685_s5 + $0x20c] ss:$28 sps:$4 sm:$0xff]  }
 0x3ac   :  { %3466 = vmatprep.subr.bf16.mxu1 %v4913_v8  ;;  %3548 = vmatprep.subr.bf16.mxu0 %v4916_v9  ;;  %v4973_v8 = vld [vmem:[%s6685_s5 + $0x208] ss:$28 sps:$4 sm:$0xff]   ;;  %v4976_v9 = vld [vmem:[%s6685_s5 + $0x3d0] ss:$28 sps:$4 sm:$0xff]  }
 0x3ad   :  { %v2267_v15 = vpop.f32.mrb[8].mxu1 }
 0x3ae   :  { %v2269_v16 = vpop.f32.mrb[9].mxu1  ;;  %v2268_v22 = vadd.f32 %v2267_v15, %v2027_v13  ;;  %v4983_v13 = vld [vmem:[%s6685_s5 + $0x27c] ss:$28 sps:$4 sm:$0xff]   ;;  %v4987_v15 = vld [vmem:[%s6685_s5 + $0x2b4] ss:$28 sps:$4 sm:$0xff]  }
 0x3af   :  { %v2270_v18 = vadd.f32 %v2269_v16, %v2031_v10  ;;  %v2271_v19 = vpop.f32.mrb[10].mxu1  ;;  %3467 = vmatpush1.bf16.msra.mxu1 %v4911_v11  ;;  %3549 = vmatpush1.bf16.msra.mxu0 %v4914_v12  ;;  %v4979_v10 = vld [vmem:[%s6685_s5 + $0x244] ss:$28 sps:$4 sm:$0xff]   ;;  %v4985_v16 = vld [vmem:[%s6685_s5 + $0x2b0] ss:$28 sps:$4 sm:$0xff]  }
 0x3b0   :  { %v2272_v23 = vpop.f32.mrb[11].mxu1  ;;  %3468 = vmatprep.subr.bf16.mxu1 %v4919_v14  ;;  %3550 = vmatprep.subr.bf16.mxu0 %v4922_v61  ;;  %v2276_v30 = vmax.f32 %v2268_v22, 0.0  ;;  %v4977_v11 = vld [vmem:[%s6685_s5 + $0x240] ss:$28 sps:$4 sm:$0xff]   ;;  %v4980_v12 = vld [vmem:[%s6685_s5 + $0x408] ss:$28 sps:$4 sm:$0xff]  }
 0x3b1   :  { %v2277_v26 = vmax.f32 %v2270_v18, 0.0  ;;  %v4981_v14 = vld [vmem:[%s6685_s5 + $0x278] ss:$28 sps:$4 sm:$0xff]   ;;  %v4984_v61 = vld [vmem:[%s6685_s5 + $0x440] ss:$28 sps:$4 sm:$0xff]  }
 0x3b2   :  { %v6387_v35 = vpack.c.bf16 %v2276_v30, %v2276_v30  ;;  %v4988_v18 = vld [vmem:[%s6685_s5 + $0x478] ss:$28 sps:$4 sm:$0xff]   ;;  %v4991_v19 = vld [vmem:[%s6685_s5 + $0x2ec] ss:$28 sps:$4 sm:$0xff]   ;;  %v4995_v22 = vld [vmem:[%s6685_s5 + $0x324] ss:$28 sps:$4 sm:$0xff]  }
 0x3b3   :  { %v6366_v27 = vpack.c.bf16 %v2277_v26, %v2277_v26  ;;  %3469 = vmatpush1.bf16.msra.mxu1 %v4917_v20  ;;  %3551 = vmatpush1.bf16.msra.mxu0 %v4920_v21  ;;  %v4989_v20 = vld [vmem:[%s6685_s5 + $0x2e8] ss:$28 sps:$4 sm:$0xff]   ;;  %v4992_v21 = vld [vmem:[%s6685_s5 + $0x4b0] ss:$28 sps:$4 sm:$0xff]   ;;  %v4993_v23 = vld [vmem:[%s6685_s5 + $0x320] ss:$28 sps:$4 sm:$0xff]  }
 0x3b4   :  { %3470 = vmatprep.subr.bf16.mxu1 %v4925_v24  ;;  %3552 = vmatprep.subr.bf16.mxu0 %v4928_v25  ;;  %v4996_v24 = vld [vmem:[%s6685_s5 + $0x4e8] ss:$28 sps:$4 sm:$0xff]   ;;  %v4999_v25 = vld [vmem:[%s6685_s5 + $0x35c] ss:$28 sps:$4 sm:$0xff]   ;;  %v5001_v30 = vld [vmem:[%s6685_s5 + $0x390] ss:$28 sps:$4 sm:$0xff]  }
 0x3b5   :  { %4274 = vmatprep.mubr.msk.bf16.mxu1 %vm1244_vm0, %v6366_v27  ;;  %4275 = vmatprep.mubr.msk.bf16.mxu0 %vm1244_vm0, %v6366_v27  ;;  %v4997_v26 = vld [vmem:[%s6685_s5 + $0x358] ss:$28 sps:$4 sm:$0xff]  }
 0x3b7   :  { %3471 = vmatpush1.bf16.msra.mxu1 %v4923_v28  ;;  %3553 = vmatpush1.bf16.msra.mxu0 %v4926_v29  ;;  %v5000_v28 = vld [vmem:[%s6685_s5 + $0x520] ss:$28 sps:$4 sm:$0xff]   ;;  %v5003_v29 = vld [vmem:[%s6685_s5 + $0x394] ss:$28 sps:$4 sm:$0xff]  }
 0x3b8   :  { %3577 = vmatprep.subr.bf16.mxu1 %v4931_v32  ;;  %4285 = vmatprep.subr.bf16.mxu0 %v4932_v33  ;;  %v5004_v32 = vld [vmem:[%s6685_s5 + $0x558] ss:$28 sps:$4 sm:$0xff]   ;;  %v5007_v33 = vld [vmem:[%s6685_s5 + $0x3cc] ss:$28 sps:$4 sm:$0xff]  }
 0x3ba   :  { %3487 = vmatmul.mubr.bf16.vlgmr.msra.gmra.mrb[12].mxu1 %v6387_v35  ;;  %3569 = vmatmul.mubr.bf16.vlgmr.msra.gmra.mrb[8].mxu0 %v6387_v35 }
 0x3bb   :  { %3578 = vmatpush1.bf16.msra.mxu1 %v4929_v34  ;;  %3609 = vmatprep.mubr.bf16.mxu1 %v6258_v46  ;;  %v5005_v34 = vld [vmem:[%s6685_s5 + $0x3c8] ss:$28 sps:$4 sm:$0xff]  }
 0x3bc   :  { %4286 = vmatpush3.bf16.msra.mxu0 %v4933_v36  ;;  %3691 = vmatprep.mubr.bf16.mxu0 %v6258_v46  ;;  %v4947_v46 = vld [vmem:[%s6685_s5 + $0x280] ss:$28 sps:$4 sm:$0xff]  }
 0x3bd   :  { %3579 = vmatprep.subr.bf16.mxu1 %v4936_v37  ;;  %4287 = vmatprep.subr.bf16.mxu0 %v4937_v38  ;;  %v5010_v36 = vld [vmem:[%s6685_s5 + $0x404] ss:$28 sps:$4 sm:$0xff]   ;;  %v5016_v37 = vld [vmem:[%s6685_s5 + $0x474] ss:$28 sps:$4 sm:$0xff]  }
 0x3be   :  { %v5014_v38 = vld [vmem:[%s6685_s5 + $0x470] ss:$28 sps:$4 sm:$0xff]  }
 0x3bf   :  { %3580 = vmatpush1.bf16.msra.mxu1 %v4934_v39  ;;  %v5019_v39 = vld [vmem:[%s6685_s5 + $0x4ac] ss:$28 sps:$4 sm:$0xff]  }
 0x3c0   :  { %4288 = vmatpush3.bf16.msra.mxu0 %v4938_v40  ;;  %3581 = vmatprep.subr.bf16.mxu1 %v4941_v41  ;;  %v5017_v40 = vld [vmem:[%s6685_s5 + $0x4a8] ss:$28 sps:$4 sm:$0xff]  }
 0x3c1   :  { %4289 = vmatprep.subr.bf16.mxu0 %v4942_v42  ;;  %v5022_v41 = vld [vmem:[%s6685_s5 + $0x4e4] ss:$28 sps:$4 sm:$0xff]  }
 0x3c2   :  { %v5020_v42 = vld [vmem:[%s6685_s5 + $0x4e0] ss:$28 sps:$4 sm:$0xff]  }
 0x3c3   :  { %3582 = vmatpush1.bf16.msra.mxu1 %v4939_v43  ;;  %v5025_v43 = vld [vmem:[%s6685_s5 + $0x51c] ss:$28 sps:$4 sm:$0xff]  }
 0x3c4   :  { %4290 = vmatpush3.bf16.msra.mxu0 %v4943_v44  ;;  %3583 = vmatprep.subr.bf16.mxu1 %v4946_v45  ;;  %v5023_v44 = vld [vmem:[%s6685_s5 + $0x518] ss:$28 sps:$4 sm:$0xff]  }
 0x3c5   :  { %4291 = vmatprep.subr.bf16.mxu0 %v4947_v46  ;;  %v5028_v45 = vld [vmem:[%s6685_s5 + $0x554] ss:$28 sps:$4 sm:$0xff]  }
 0x3c6   :  { %v5026_v46 = vld [vmem:[%s6685_s5 + $0x550] ss:$28 sps:$4 sm:$0xff]  }
 0x3c7   :  { %3584 = vmatpush1.bf16.msra.mxu1 %v4944_v47  ;;  %v6627_v47 = vsub.s32 3, %v5883_v57  ;;  %v5061_v57 = vld [vmem:[%s6686_s6 + $0x18] sm:$0xff] }
 0x3c8   :  { %4292 = vmatpush3.bf16.msra.mxu0 %v4948_v59  ;;  %3585 = vmatprep.subr.bf16.mxu1 %v4951_v60  ;;  %v5059_v59 = vld [vmem:[%s6686_s6] sm:$0xff] }
 0x3c9   :  { %4293 = vmatprep.subr.bf16.mxu0 %v4952_v49  ;;  %v2485_v60 = vrot.slane %v5059_v59, %v6627_v47  ;;  %v2493_v49 = vrot.slane %v5944_v31, %v6627_v47 }
 0x3cb   :  { %3586 = vmatpush1.bf16.msra.mxu1 %v4949_v50  ;;  %v5060_v50 = vld [vmem:[%s6686_s6 + $0x8] sm:$0xff] }
 0x3cc   :  { %4294 = vmatpush3.bf16.msra.mxu0 %v4953_v51  ;;  %3587 = vmatprep.subr.bf16.mxu1 %v4956_v52  ;;  %v2489_v51 = vrot.slane %v5060_v50, %v6627_v47 }
 0x3cd   :  { %4295 = vmatprep.subr.bf16.mxu0 %v4957_v53 }
 0x3cf   :  { %3588 = vmatpush1.bf16.msra.mxu1 %v4954_v54 }
 0x3d0   :  { %4296 = vmatpush3.bf16.msra.mxu0 %v4958_v55  ;;  %3589 = vmatprep.subr.bf16.mxu1 %v4961_v56 }
 0x3d1   :  { %4297 = vmatprep.subr.bf16.mxu0 %v4962_v58 }
 0x3d3   :  { %3590 = vmatpush1.bf16.msra.mxu1 %v4959_v62 }
 0x3d4   :  { %4298 = vmatpush3.bf16.msra.mxu0 %v4963_v63  ;;  %3591 = vmatprep.subr.bf16.mxu1 %v4966_v0 }
 0x3d5   :  { %4299 = vmatprep.subr.bf16.mxu0 %v4967_v1 }
 0x3d7   :  { %3592 = vmatpush1.bf16.msra.mxu1 %v4964_v2 }
 0x3d8   :  { %4300 = vmatpush3.bf16.msra.mxu0 %v4968_v3  ;;  %3593 = vmatprep.subr.bf16.mxu1 %v4971_v4 }
 0x3d9   :  { %3699 = vmatprep.subr.bf16.mxu0 %v5110_v17 }
 0x3db   :  { %3692 = vmatmul.mubr.bf16.vlgmr.msra.gmra.mrb[12].mxu0 %v6266_v48  ;;  %3594 = vmatpush1.bf16.msra.mxu1 %v4969_v5 }
 0x3dc   :  { %3700 = vmatpush1.bf16.msra.mxu0 %v4972_v6  ;;  %4277 = vmatprep.mubr.msk.bf16.mxu0 %vm1244_vm0, %v6366_v27 }
 0x3dd   :  { %3595 = vmatprep.subr.bf16.mxu1 %v4975_v7  ;;  %3701 = vmatprep.subr.bf16.mxu0 %v5110_v17 }
 0x3df   :  { %3596 = vmatpush1.bf16.msra.mxu1 %v4973_v8 }
 0x3e0   :  { %3702 = vmatpush1.bf16.msra.mxu0 %v4976_v9  ;;  %3597 = vmatprep.subr.bf16.mxu1 %v4979_v10 }
 0x3e1   :  { %3703 = vmatprep.subr.bf16.mxu0 %v5110_v17 }
 0x3e3   :  { %3598 = vmatpush1.bf16.msra.mxu1 %v4977_v11 }
 0x3e4   :  { %3704 = vmatpush1.bf16.msra.mxu0 %v4980_v12  ;;  %3599 = vmatprep.subr.bf16.mxu1 %v4983_v13 }
 0x3e5   :  { %3705 = vmatprep.subr.bf16.mxu0 %v5110_v17 }
 0x3e7   :  { %3600 = vmatpush1.bf16.msra.mxu1 %v4981_v14 }
 0x3e8   :  { %3706 = vmatpush1.bf16.msra.mxu0 %v4984_v61  ;;  %3601 = vmatprep.subr.bf16.mxu1 %v4987_v15 }
 0x3e9   :  { %3707 = vmatprep.subr.bf16.mxu0 %v5110_v17 }
 0x3eb   :  { %3602 = vmatpush1.bf16.msra.mxu1 %v4985_v16 }
 0x3ec   :  { %3708 = vmatpush1.bf16.msra.mxu0 %v4988_v18  ;;  %3603 = vmatprep.subr.bf16.mxu1 %v4991_v19 }
 0x3ed   :  { %3709 = vmatprep.subr.bf16.mxu0 %v5110_v17 }
 0x3ef   :  { %3604 = vmatpush1.bf16.msra.mxu1 %v4989_v20 }
 0x3f0   :  { %3710 = vmatpush1.bf16.msra.mxu0 %v4992_v21  ;;  %3605 = vmatprep.subr.bf16.mxu1 %v4995_v22 }
 0x3f1   :  { %3711 = vmatprep.subr.bf16.mxu0 %v5110_v17 }
 0x3f3   :  { %3606 = vmatpush1.bf16.msra.mxu1 %v4993_v23 }
 0x3f4   :  { %3712 = vmatpush1.bf16.msra.mxu0 %v4996_v24  ;;  %3607 = vmatprep.subr.bf16.mxu1 %v4999_v25 }
 0x3f5   :  { %3713 = vmatprep.subr.bf16.mxu0 %v5110_v17 }
 0x3f7   :  { %3608 = vmatpush1.bf16.msra.mxu1 %v4997_v26 }
 0x3f8   :  { %3714 = vmatpush1.bf16.msra.mxu0 %v5000_v28  ;;  %3618 = vmatprep.subr.bf16.mxu1 %v5003_v29 }
 0x3f9   :  { %3715 = vmatprep.subr.bf16.mxu0 %v5110_v17  ;;  %v5008_v17 = vld [vmem:[%s6685_s5 + $0x400] ss:$28 sps:$4 sm:$0xff]  }
 0x3fa   :  { %3610 = vmatmul.mubr.bf16.vlgmr.msra.gmra.mrb[16].mxu1 %v6266_v48  ;;  %v5013_v48 = vld [vmem:[%s6685_s5 + $0x43c] ss:$28 sps:$4 sm:$0xff]  }
 0x3fb   :  { %3619 = vmatpush1.bf16.msra.mxu1 %v5001_v30  ;;  %4276 = vmatprep.mubr.msk.bf16.mxu1 %vm1244_vm0, %v6366_v27  ;;  %v5011_v27 = vld [vmem:[%s6685_s5 + $0x438] ss:$28 sps:$4 sm:$0xff]  }
 0x3fc   :  { %3716 = vmatpush1.bf16.msra.mxu0 %v5004_v32  ;;  %3620 = vmatprep.subr.bf16.mxu1 %v5007_v33 }
 0x3ff   :  { %3732 = vmatmul.mubr.bf16.vlgmr.msra.gmra.mrb[16].mxu0 %v6387_v35  ;;  %3621 = vmatpush1.bf16.msra.mxu1 %v5005_v34 }
 0x400   :  { %3622 = vmatprep.subr.bf16.mxu1 %v5010_v36 }
 0x403   :  { %3623 = vmatpush1.bf16.msra.mxu1 %v5008_v17 }
 0x404   :  { %3624 = vmatprep.subr.bf16.mxu1 %v5013_v48 }
 0x407   :  { %3625 = vmatpush1.bf16.msra.mxu1 %v5011_v27 }
 0x408   :  { %3626 = vmatprep.subr.bf16.mxu1 %v5016_v37 }
 0x40b   :  { %3627 = vmatpush1.bf16.msra.mxu1 %v5014_v38 }
 0x40c   :  { %3628 = vmatprep.subr.bf16.mxu1 %v5019_v39 }
 0x40f   :  { %3629 = vmatpush1.bf16.msra.mxu1 %v5017_v40 }
 0x410   :  { %3630 = vmatprep.subr.bf16.mxu1 %v5022_v41 }
 0x413   :  { %3631 = vmatpush1.bf16.msra.mxu1 %v5020_v42 }
 0x414   :  { %3632 = vmatprep.subr.bf16.mxu1 %v5025_v43 }
 0x417   :  { %3633 = vmatpush1.bf16.msra.mxu1 %v5023_v44 }
 0x418   :  { %3634 = vmatprep.subr.bf16.mxu1 %v5028_v45 }
 0x41b   :  { %3635 = vmatpush1.bf16.msra.mxu1 %v5026_v46 }
 0x41e   :  { %3651 = vmatmul.mubr.bf16.vlgmr.msra.gmra.mrb[16].mxu1 %v6387_v35  ;;  %v2497_v35 = vrot.slane %v5061_v57, %v6627_v47 }
 0x48d   :  { %v3488_v52 = vpop.f32.mrb[12].mxu1  ;;  %v3570_v53 = vpop.f32.mrb[8].mxu0 }
 0x48e   :  { %v4313_v54 = vadd.f32 %v3488_v52, %v2485_v60  ;;  %v4315_v55 = vadd.f32 %v3570_v53, %v2493_v49  ;;  %v3490_v56 = vpop.f32.mrb[13].mxu1  ;;  %v3572_v58 = vpop.f32.mrb[9].mxu0 }
 0x48f   :  { %v4314_v62 = vadd.f32 %v3490_v56, %v2489_v51  ;;  %v4316_v31 = vadd.f32 %v3572_v58, %v2497_v35  ;;  %v3492_v63 = vpop.f32.mrb[14].mxu1  ;;  %v3574_v0 = vpop.f32.mrb[10].mxu0 }
 0x490   :  { %v4278_v1 = vmul.f32 -1.442695, %v4313_v54  ;;  %v4280_v2 = vmul.f32 -1.442695, %v4315_v55  ;;  %v3493_v3 = vpop.f32.mrb[15].mxu1  ;;  %v3575_v4 = vpop.f32.mrb[11].mxu0 }
 0x491   :  { %v4279_v5 = vmul.f32 -1.442695, %v4314_v62  ;;  %v4281_v6 = vmul.f32 -1.442695, %v4316_v31 }
 0x492   :  { %5031 = vpow2.f32 %v4278_v1 }
 0x493   :  { %5033 = vpow2.f32 %v4280_v2 }
 0x494   :  { %5073 = shalt.err (!%p5070_p4)
}
 0x495   :  { %s5074_s27 = scalar_lea.hbm %s6688_s8, 256 }
 0x496   :  { %p5075_p5 = scmp.ne.s32.totalorder %s6688_s8, %s5074_s27  ;;  %p5078_p6 = scmp.lt.u32.totalorder %s5074_s27, %s6688_s8 }
 0x498   :  { %p5080_p7 = pnand %p5078_p6, %p5075_p5 }
 0x49a   :  { %5083 = shalt.err (!%p5080_p7)
}
 0x49b   :  { %3809 = dma.vmem_to_hbm [thread:$0]  %s3807_s23, 256, %s6688_s8, [#allocation5]   ;;  %5035 = vpow2.f32 %v4279_v5  ;;  %v44_v24 = vld [vmem:[%s6686_s6 + $0x30] sm:$0xff]  ;;  %v42_v48 = vld [vmem:[%s6686_s6 + $0x20] sm:$0xff]  ;;  %v43_v27 = vld [vmem:[%s6686_s6 + $0x28] sm:$0xff] }
 0x49c   :  { %5037 = vpow2.f32 %v4281_v6  ;;  %v5032_v7 = vpop.eup %5031  ;;  %v2509_v25 = vrot.slane %v44_v24, %v6627_v47  ;;  %v2501_v38 = vrot.slane %v42_v48, %v6627_v47  ;;  %v2505_v39 = vrot.slane %v43_v27, %v6627_v47  ;;  %s5112_s6 = smov [#allocation2]  }
 0x49d   :  { %v5034_v8 = vpop.eup %5033  ;;  %v3760_v9 = vadd.f32 1.0, %v5032_v7  ;;  %s3796_s2 = sshll.u32 %s5112_s6, 4  ;;  %s3797_s2 = int_to_ptr.vmem [resolvable:$true] %s3796_s2 }
 0x49e   :  { %v3762_v11 = vadd.f32 1.0, %v5034_v8  ;;  %s5084_s3 = scalar_lea.vmem %s3797_s2, 896  ;;  %p5089_p9 = scmp.lt.s32.totalorder %s3797_s2, %s3797_s2 }
 0x49f   :  { %5039 = vrcp.f32 %v3760_v9  ;;  %p5085_p8 = scmp.ne.s32.totalorder %s3797_s2, %s5084_s3  ;;  %p5090_p10 = scmp.lt.s32.totalorder %s5084_s3, %s5084_s3 }
 0x4a0   :  { %5041 = vrcp.f32 %v3762_v11 }
 0x4a1   :  { %p5091_p11 = por %p5090_p10, %p5089_p9 }
 0x4a3   :  { %p5092_p12 = pnand %p5091_p11, %p5085_p8 }
 0x4a5   :  { %v5036_v10 = vpop.eup %5035 }
 0x4a6   :  { %v5038_v12 = vpop.eup %5037  ;;  %v3761_v13 = vadd.f32 1.0, %v5036_v10 }
 0x4a7   :  { %v3763_v14 = vadd.f32 1.0, %v5038_v12 }
 0x4a8   :  { %5043 = vrcp.f32 %v3761_v13 }
 0x4a9   :  { %5045 = vrcp.f32 %v3763_v14  ;;  %v5040_v61 = vpop.eup %5039 }
 0x4aa   :  { %v5042_v15 = vpop.eup %5041  ;;  %3781 = vst [vmem:[#allocation2] sm:$0xff] %v5040_v61 }
 0x4ab   :  { %3783 = vst [vmem:[#allocation2 + $0x10] sm:$0xff] %v5042_v15 }
 0x4ae   :  { %v4301_v19 = vpop.f32.mrb[12].mxu0 }
 0x4af   :  { %v4302_v20 = vpop.f32.mrb[13].mxu0 }
 0x4b0   :  { %v4303_v21 = vadd.f32 %v4302_v20, %v4301_v19  ;;  %v4304_v22 = vpop.f32.mrb[14].mxu0 }
 0x4b1   :  { %v4305_v23 = vpop.f32.mrb[15].mxu0 }
 0x4b2   :  { %v5044_v16 = vpop.eup %5043  ;;  %v3694_v26 = vadd.f32 %v4303_v21, %v2509_v25 }
 0x4b3   :  { %v5046_v18 = vpop.eup %5045  ;;  %3782 = vst [vmem:[#allocation2 + $0x8] sm:$0xff] %v5044_v16 }
 0x4b4   :  { %3784 = vst [vmem:[#allocation2 + $0x18] sm:$0xff] %v5046_v18 }
 0x4d2   :  { %v3733_v28 = vpop.f32.mrb[16].mxu0 }
 0x4d3   :  { %v3734_v29 = vadd.f32 %v3733_v28, %v3694_v26  ;;  %v3735_v30 = vpop.f32.mrb[17].mxu0 }
 0x4d4   :  { %v3736_v32 = vpop.f32.mrb[18].mxu0 }
 0x4d5   :  { %v4284_v33 = vmul.f32 -1.442695, %v3734_v29  ;;  %v3737_v34 = vpop.f32.mrb[19].mxu0 }
 0x4d7   :  { %5047 = vpow2.f32 %v4284_v33 }
 0x4e1   :  { %v5048_v36 = vpop.eup %5047 }
 0x4e2   :  { %v3766_v17 = vadd.f32 1.0, %v5048_v36 }
 0x4e4   :  { %5049 = vrcp.f32 %v3766_v17 }
 0x4ee   :  { %v5050_v37 = vpop.eup %5049 }
 0x4ef   :  { %3787 = vst.msk [vmem:[#allocation2 + $0x30] sm:$0xff] %vm1244_vm0, %v5050_v37 }
 0x4f1   :  { %v3652_v40 = vpop.f32.mrb[16].mxu1 }
 0x4f2   :  { %v4317_v41 = vadd.f32 %v3652_v40, %v2501_v38  ;;  %v3654_v42 = vpop.f32.mrb[17].mxu1 }
 0x4f3   :  { %v4318_v43 = vadd.f32 %v3654_v42, %v2505_v39  ;;  %v3656_v44 = vpop.f32.mrb[18].mxu1 }
 0x4f4   :  { %v4282_v45 = vmul.f32 -1.442695, %v4317_v41  ;;  %v3657_v46 = vpop.f32.mrb[19].mxu1 }
 0x4f5   :  { %v4283_v59 = vmul.f32 -1.442695, %v4318_v43 }
 0x4f6   :  { %5051 = vpow2.f32 %v4282_v45 }
 0x4f7   :  { %5053 = vpow2.f32 %v4283_v59 }
 0x500   :  { %v5052_v60 = vpop.eup %5051 }
 0x501   :  { %v5054_v49 = vpop.eup %5053  ;;  %v3764_v50 = vadd.f32 1.0, %v5052_v60 }
 0x502   :  { %v3765_v51 = vadd.f32 1.0, %v5054_v49 }
 0x503   :  { %5055 = vrcp.f32 %v3764_v50 }
 0x504   :  { %5057 = vrcp.f32 %v3765_v51 }
 0x50d   :  { %v5056_v57 = vpop.eup %5055 }
 0x50e   :  { %v5058_v47 = vpop.eup %5057  ;;  %3785 = vst [vmem:[#allocation2 + $0x20] sm:$0xff] %v5056_v57 }
 0x50f   :  { %3786 = vst [vmem:[#allocation2 + $0x28] sm:$0xff] %v5058_v47 }
 0x510   :  { %5095 = shalt.err (!%p5092_p12)
}
 0x511   :  { %s5096_s18 = scalar_lea.hbm %s6687_s7, 896 }
 0x512   :  { %p5097_p13 = scmp.ne.s32.totalorder %s6687_s7, %s5096_s18  ;;  %p5100_p0 = scmp.lt.u32.totalorder %s5096_s18, %s6687_s7 }
 0x514   :  { %p5102_p1 = pnand %p5100_p0, %p5097_p13 }
 0x516   :  { %5105 = shalt.err (!%p5102_p1)
}
 0x517   :  { %3799 = dma.vmem_to_hbm [thread:$0]  %s3797_s2, 896, %s6687_s7, [#allocation3]  }
 0x518   :  { %5106 = dma.done.wait [#allocation3], 896  }
 0x519   :  { %5107 = vsyncadd [#allocation3], 4294966400 }
 0x51a   :  { %5108 = dma.done.wait [#allocation5], 256  }
 0x51b   :  { %5109 = vsyncadd [#allocation5], 4294967040 }
 0x51c   :  { %3816 = vsyncpa [#allocation3], 1 }
 0x51d   :  { %3817 = vsyncpa [#allocation5], 1 }

</bundles_post_ra>
